<compile_context>
chip_gen: v7x
topology: tpu7x:2x2x1
jax: 0.10.0
libtpu: 0.0.40
codegen_flags: <defaults>
</compile_context>

<pallas_src>
import functools

import jax
import jax.numpy as jnp
from jax import lax
from jax.experimental import pallas as pl
from jax.experimental.pallas import tpu as pltpu


def _cdiv(a, b):
    return (a + b - 1) // b


def _round_up(a, b):
    return _cdiv(a, b) * b


def _pick_vmem_limit():
    """Generation-aware scoped-VMEM cap: ~75% of physical VMEM (48 MiB on v7x,
    96 MiB on v5e/v6e), conservative 48 MiB fallback if the query fails."""
    try:
        info = pltpu.get_tpu_info()
        cap = getattr(info, "vmem_capacity_bytes", None)
        if cap:
            return int(min(cap * 3 // 4, 100 * 1024 * 1024))
    except Exception:
        pass
    return 48 * 1024 * 1024


_VMEM_LIMIT = _pick_vmem_limit()


# ----------------------------------------------------------------------------
# Shared per-tap contraction (K = 3*Cin), aligned dynamic-slice loads
# ----------------------------------------------------------------------------
def _conv_tap(x_ref, base, extra, tile, wt, k3):
    off = base + extra
    if extra % 8 == 0:
        # base = program_id * tile (tile % 8 == 0) and extra % 8 == 0 -> aligned vld
        off = pl.multiple_of(off, 8)
    xt = x_ref[pl.ds(off, tile), :]
    if k3 <= 8:
        # tiny contraction dim (Cin=1 layers): VPU broadcast-multiply beats the MXU
        acc = xt[:, 0:1].astype(jnp.float32) * wt[0:1, :].astype(jnp.float32)
        for c in range(1, k3):
            acc = acc + (xt[:, c:c + 1].astype(jnp.float32)
                         * wt[c:c + 1, :].astype(jnp.float32))
        return acc
    return jnp.dot(xt, wt, preferred_element_type=jnp.float32)


# ----------------------------------------------------------------------------
# Fused stride-1 3x3 conv (dj taps folded into K in the wrapper -> 3 matmuls)
# ----------------------------------------------------------------------------
def _conv_s1_kernel(x_ref, w_ref, b_ref, o_ref, *, W, k3, tile, act):
    # x_ref : (need_rows, 3*Cin) bf16 : width-folded, row-padded image (per batch)
    # w_ref : (3, 3*Cin, Cout) bf16  ;  b_ref : (1, Cout) f32
    # o_ref : (tile, Cout)           : output rows [ti*tile, ...) of H*W flattening
    base = pl.program_id(1) * tile
    acc = _conv_tap(x_ref, base, 0, tile, w_ref[0], k3)
    acc = acc + _conv_tap(x_ref, base, W, tile, w_ref[1], k3)
    acc = acc + _conv_tap(x_ref, base, 2 * W, tile, w_ref[2], k3)
    y = acc + b_ref[...]
    if act == "relu":
        y = jnp.maximum(y, 0.0)
    o_ref[...] = y.astype(o_ref.dtype)


def conv3x3_s1(x_nhwc, w_hwio, b, act="none", out_dtype=jnp.bfloat16, tile_mo=1024):
    """3x3 conv, padding=1, stride=1. dj (width) taps are folded into the channel
    dim wrapper-side; the kernel applies the 3 di (row) taps with aligned offsets."""
    B, H, W, Cin = x_nhwc.shape
    Cout = w_hwio.shape[-1]
    K3 = 3 * Cin
    Mo = H * W
    tile = min(tile_mo, _round_up(Mo, 8))
    T = _cdiv(Mo, tile)
    Mo_pad = T * tile

    xpad = jnp.pad(x_nhwc.astype(jnp.bfloat16), ((0, 0), (1, 1), (1, 1), (0, 0)))
    # xdj[b, h, c, dj*Cin+ci] = xpad[b, h, c+dj, ci]   -> (B, H+2, W, 3*Cin)
    xdj = jnp.concatenate([xpad[:, :, 0:W, :],
                           xpad[:, :, 1:W + 1, :],
                           xpad[:, :, 2:W + 2, :]], axis=-1)
    xf = xdj.reshape(B, (H + 2) * W, K3)
    need_rows = Mo_pad + 2 * W + 8          # slack for tile-padded junk output rows
    xf = jnp.pad(xf, ((0, 0), (0, need_rows - (H + 2) * W), (0, 0)))
    # TODO(synk): for very large resolutions the per-batch image block should be
    # halo-row tiled (pl.Element / manual DMA) instead of kept whole in VMEM.

    w3 = w_hwio.reshape(3, K3, Cout).astype(jnp.bfloat16)
    out = pl.pallas_call(
        functools.partial(_conv_s1_kernel, W=W, k3=K3, tile=tile, act=act),
        out_shape=jax.ShapeDtypeStruct((B, Mo_pad, Cout), out_dtype),
        grid=(B, T),
        in_specs=[
            pl.BlockSpec((None, need_rows, K3), lambda bi, ti: (bi, 0, 0)),
            pl.BlockSpec((3, K3, Cout), lambda bi, ti: (0, 0, 0)),
            pl.BlockSpec((1, Cout), lambda bi, ti: (0, 0)),
        ],
        out_specs=pl.BlockSpec((None, tile, Cout), lambda bi, ti: (bi, ti, 0)),
        compiler_params=pltpu.CompilerParams(
            dimension_semantics=("parallel", "parallel"),
            vmem_limit_bytes=_VMEM_LIMIT),
    )(xf, w3, b.reshape(1, Cout).astype(jnp.float32))
    if Mo_pad != Mo:
        out = out[:, :Mo, :]
    return out.reshape(B, H, W, Cout)


# ----------------------------------------------------------------------------
# Fused stride-2 3x3 conv (phase decomposition: even/odd row phases, dj fold)
# ----------------------------------------------------------------------------
def _conv_s2_kernel(xe_ref, xo_ref, w_ref, b_ref, o_ref, *, Wo, k3, tile, act):
    base = pl.program_id(1) * tile
    acc = _conv_tap(xe_ref, base, 0, tile, w_ref[0], k3)       # di = 0 (even row)
    acc = acc + _conv_tap(xo_ref, base, 0, tile, w_ref[1], k3)  # di = 1 (odd row)
    acc = acc + _conv_tap(xe_ref, base, Wo, tile, w_ref[2], k3)  # di = 2 (next even)
    y = acc + b_ref[...]
    if act == "relu":
        y = jnp.maximum(y, 0.0)
    o_ref[...] = y.astype(o_ref.dtype)


def conv3x3_s2(x_nhwc, w_hwio, b, act="none", out_dtype=jnp.bfloat16, tile_mo=1024):
    """3x3 conv, padding=1, stride=2, fused in-kernel (no 9x im2col HBM tensor)."""
    B, H, W, Cin = x_nhwc.shape
    assert H % 2 == 0 and W % 2 == 0
    Cout = w_hwio.shape[-1]
    Ho, Wo = H // 2, W // 2
    K3 = 3 * Cin
    Mo = Ho * Wo
    tile = min(tile_mo, _round_up(Mo, 8))
    T = _cdiv(Mo, tile)
    Mo_pad = T * tile

    xpad = jnp.pad(x_nhwc.astype(jnp.bfloat16), ((0, 0), (1, 1), (1, 1), (0, 0)))
    # xdj[b, h, co, dj*Cin+ci] = xpad[b, h, 2*co+dj, ci]   -> (B, H+2, Wo, 3*Cin)
    xdj = jnp.concatenate([xpad[:, :, dj:dj + 2 * Wo:2, :] for dj in range(3)],
                          axis=-1)
    xe = xdj[:, 0::2]                      # even padded rows, (B, Ho+1, Wo, 3*Cin)
    xo = xdj[:, 1::2]                      # odd padded rows,  (B, Ho+1, Wo, 3*Cin)
    need_rows = Mo_pad + Wo + 8

    def _flat(t):
        t = t.reshape(B, -1, K3)
        return jnp.pad(t, ((0, 0), (0, need_rows - t.shape[1]), (0, 0)))

    xe_f, xo_f = _flat(xe), _flat(xo)
    w3 = w_hwio.reshape(3, K3, Cout).astype(jnp.bfloat16)

    out = pl.pallas_call(
        functools.partial(_conv_s2_kernel, Wo=Wo, k3=K3, tile=tile, act=act),
        out_shape=jax.ShapeDtypeStruct((B, Mo_pad, Cout), out_dtype),
        grid=(B, T),
        in_specs=[
            pl.BlockSpec((None, need_rows, K3), lambda bi, ti: (bi, 0, 0)),
            pl.BlockSpec((None, need_rows, K3), lambda bi, ti: (bi, 0, 0)),
            pl.BlockSpec((3, K3, Cout), lambda bi, ti: (0, 0, 0)),
            pl.BlockSpec((1, Cout), lambda bi, ti: (0, 0)),
        ],
        out_specs=pl.BlockSpec((None, tile, Cout), lambda bi, ti: (bi, ti, 0)),
        compiler_params=pltpu.CompilerParams(
            dimension_semantics=("parallel", "parallel"),
            vmem_limit_bytes=_VMEM_LIMIT),
    )(xe_f, xo_f, w3, b.reshape(1, Cout).astype(jnp.float32))
    if Mo_pad != Mo:
        out = out[:, :Mo, :]
    return out.reshape(B, Ho, Wo, Cout)


# ----------------------------------------------------------------------------
# Fused 3-layer renderer MLP (relu -> relu -> tanh), M-tiled, 128-lane aligned,
# hidden dims zero-padded to 128, lane-dense transposed final store.
# ----------------------------------------------------------------------------
def _mlp_render_kernel(feat_ref, ext_ref, w1f_ref, w1e_ref, b1_ref,
                       w2_ref, b2_ref, w3t_ref, b3_ref, o_ref):
    h = jnp.dot(feat_ref[...], w1f_ref[...], preferred_element_type=jnp.float32)
    ext = ext_ref[...]                                    # (tile_m, 4) f32
    w1e = w1e_ref[...]                                    # (4, H1) f32
    for c in range(ext.shape[1]):                         # K=4 term on the VPU
        h = h + ext[:, c:c + 1] * w1e[c:c + 1, :]
    h = jnp.maximum(h + b1_ref[...], 0.0)
    h = jnp.dot(h.astype(jnp.bfloat16), w2_ref[...],
                preferred_element_type=jnp.float32) + b2_ref[...]
    h = jnp.maximum(h, 0.0)
    # final layer computed transposed: (Co_p, H2) x (tile_m, H2)^T -> (Co_p, tile_m)
    y = lax.dot_general(w3t_ref[...], h.astype(jnp.bfloat16),
                        (((1,), (1,)), ((), ())),
                        preferred_element_type=jnp.float32) + b3_ref[...]
    o_ref[...] = jnp.tanh(y).astype(o_ref.dtype)          # lane-dense store


def _pad2d(a, rows, cols, dtype):
    a = a.astype(dtype)
    return jnp.pad(a, ((0, rows - a.shape[0]), (0, cols - a.shape[1])))


def mlp_render(feat2d, ext2d, params, tile_m=1024):
    w1, b1, w2, b2, w3, b3 = params
    M, Df = feat2d.shape
    De = ext2d.shape[1]
    assert w1.shape[0] == Df + De
    w1f, w1e = w1[:Df], w1[Df:]
    H1 = _round_up(w1.shape[1], 128)     # zero-pad hidden dims -> lane-dense, free MXU cols
    H2 = _round_up(w2.shape[1], 128)
    Co = w3.shape[1]
    Co_p = _round_up(Co, 8)

    w1f_p = _pad2d(w1f, Df, H1, jnp.bfloat16)
    w1e_p = _pad2d(w1e, De, H1, jnp.float32)
    b1_p = _pad2d(b1.reshape(1, -1), 1, H1, jnp.float32)
    w2_p = _pad2d(w2, H1, H2, jnp.bfloat16)
    b2_p = _pad2d(b2.reshape(1, -1), 1, H2, jnp.float32)
    w3t_p = _pad2d(w3.T, Co_p, H2, jnp.bfloat16)
    b3_p = _pad2d(b3.reshape(-1, 1), Co_p, 1, jnp.float32)

    tile_m = min(tile_m, _round_up(M, 8))
    grid_m = _cdiv(M, tile_m)
    Mp = grid_m * tile_m
    if Mp != M:
        feat2d = jnp.pad(feat2d, ((0, Mp - M), (0, 0)))
        ext2d = jnp.pad(ext2d, ((0, Mp - M), (0, 0)))

    out_t = pl.pallas_call(
        _mlp_render_kernel,
        out_shape=jax.ShapeDtypeStruct((Co_p, Mp), jnp.float32),
        grid=(grid_m,),
        in_specs=[
            pl.BlockSpec((tile_m, Df), lambda i: (i, 0)),
            pl.BlockSpec((tile_m, De), lambda i: (i, 0)),
            pl.BlockSpec((Df, H1), lambda i: (0, 0)),
            pl.BlockSpec((De, H1), lambda i: (0, 0)),
            pl.BlockSpec((1, H1), lambda i: (0, 0)),
            pl.BlockSpec((H1, H2), lambda i: (0, 0)),
            pl.BlockSpec((1, H2), lambda i: (0, 0)),
            pl.BlockSpec((Co_p, H2), lambda i: (0, 0)),
            pl.BlockSpec((Co_p, 1), lambda i: (0, 0)),
        ],
        out_specs=pl.BlockSpec((Co_p, tile_m), lambda i: (0, i)),
        compiler_params=pltpu.CompilerParams(
            dimension_semantics=("parallel",),
            vmem_limit_bytes=_VMEM_LIMIT),
    )(feat2d.astype(jnp.bfloat16), ext2d.astype(jnp.float32),
      w1f_p, w1e_p, b1_p, w2_p, b2_p, w3t_p, b3_p)
    return out_t[:Co, :M].T                               # (M, Co)


# ----------------------------------------------------------------------------
# Tiled, lane-dense L1 loss; 2-way "parallel" split (both TCs on v7x), each split
# gets its own partial-sum block (no write race), large 2048-row tiles.
# ----------------------------------------------------------------------------
def _l1_partial_kernel(p_ref, g_ref, o_ref):
    @pl.when(pl.program_id(1) == 0)
    def _():
        o_ref[...] = jnp.zeros_like(o_ref)
    d = jnp.abs(p_ref[...] - g_ref[...])
    o_ref[...] += jnp.sum(d.reshape(-1, 8, 128), axis=0)


def l1_loss(pred, gt, tile_rows=2048, n_split=2):
    p = pred.reshape(-1).astype(jnp.float32)
    g = gt.reshape(-1).astype(jnp.float32)
    n = p.shape[0]
    lanes = 128
    rows = _cdiv(n, lanes)
    rows_per = _cdiv(rows, n_split)
    tile = min(tile_rows, _round_up(rows_per, 8))
    grid_r = _cdiv(rows_per, tile)
    rows_pad = n_split * grid_r * tile
    n_pad = rows_pad * lanes
    if n_pad != n:                        # zero padding contributes 0 to |p - g|
        p = jnp.pad(p, (0, n_pad - n))
        g = jnp.pad(g, (0, n_pad - n))
    p3 = p.reshape(n_split, grid_r * tile, lanes)
    g3 = g.reshape(n_split, grid_r * tile, lanes)
    partial = pl.pallas_call(
        _l1_partial_kernel,
        out_shape=jax.ShapeDtypeStruct((n_split * 8, lanes), jnp.float32),
        grid=(n_split, grid_r),
        in_specs=[pl.BlockSpec((None, tile, lanes), lambda c, i: (c, i, 0)),
                  pl.BlockSpec((None, tile, lanes), lambda c, i: (c, i, 0))],
        out_specs=pl.BlockSpec((8, lanes), lambda c, i: (c, 0)),
        compiler_params=pltpu.CompilerParams(
            dimension_semantics=("parallel", "arbitrary"),
            vmem_limit_bytes=_VMEM_LIMIT),
    )(p3, g3)
    return jnp.sum(partial) / n           # normalize by the true element count


# ----------------------------------------------------------------------------
# Encoder / decoder / renderer (glue around the Pallas kernels)
# ----------------------------------------------------------------------------
def encoder_fwd(x_nchw, p):
    x = jnp.transpose(x_nchw, (0, 2, 3, 1))                       # -> NHWC
    h = conv3x3_s1(x, p["e_w1"], p["e_b1"], act="relu")            # bf16
    h = conv3x3_s2(h, p["e_w2"], p["e_b2"], act="relu")            # bf16, /2
    z = conv3x3_s1(h, p["e_w3"], p["e_b3"], act="none",
                   out_dtype=jnp.float32)                          # z_channels (tiny)
    return jnp.transpose(z, (0, 3, 1, 2))                          # NCHW latent


def decoder_fwd(z_nchw, p):
    z = jnp.transpose(z_nchw, (0, 2, 3, 1))
    h = conv3x3_s1(z, p["d_w1"], p["d_b1"], act="relu")            # bf16
    h = jnp.repeat(jnp.repeat(h, 2, axis=1), 2, axis=2)            # nearest x2
    phi = conv3x3_s1(h, p["d_w2"], p["d_b2"], act="none")          # bf16 features
    return phi                                                     # NHWC (B,H,W,128)


def renderer_fwd(phi_nhwc, coord, cell, p):
    """ConcatWrapper: nearest-sample phi at coord, concat rel-coord & cell, MLP, tanh."""
    B, H, W, Cphi = phi_nhwc.shape
    Q = coord.shape[1]
    # TODO(synk): sampling convention (coord[...,0]->H, floor((c+1)/2*size)) assumed;
    # verify against the original ConcatWrapper / grid_sample rounding.
    ix = jnp.clip(jnp.floor((coord[..., 0] + 1.0) * 0.5 * H), 0, H - 1).astype(jnp.int32)
    iy = jnp.clip(jnp.floor((coord[..., 1] + 1.0) * 0.5 * W), 0, W - 1).astype(jnp.int32)
    flat_idx = ix * W + iy                                          # (B, Q)
    phi_flat = phi_nhwc.reshape(B, H * W, Cphi)
    # TODO(synk): fuse this nearest-neighbour gather into the MLP kernel (scalar
    # prefetch + in-VMEM row gather) to avoid one HBM round trip of feat.
    feat = jnp.take_along_axis(phi_flat, flat_idx[..., None], axis=1)  # (B,Q,Cphi) bf16
    cx = -1.0 + (2.0 * ix.astype(jnp.float32) + 1.0) / H
    cy = -1.0 + (2.0 * iy.astype(jnp.float32) + 1.0) / W
    rel = jnp.stack([(coord[..., 0] - cx) * H, (coord[..., 1] - cy) * W], axis=-1)
    rel_cell = cell * jnp.asarray([H, W], jnp.float32)
    ext = jnp.concatenate([rel, rel_cell], axis=-1)                 # (B,Q,4)
    out2d = mlp_render(
        feat.reshape(B * Q, Cphi), ext.reshape(B * Q, 4),
        (p["r_w1"], p["r_b1"], p["r_w2"], p["r_b2"], p["r_w3"], p["r_b3"]))
    Co = out2d.shape[-1]
    return out2d.reshape(B, Q, Co)


def nfae_call(params, input_batch, compute_loss=True, latent_only=False):
    """Mirrors NFAE.call (no-mask path).
    TODO(synk): the optional 'mask'/'shape_up' variable-size paths are not implemented."""
    z = encoder_fwd(input_batch["inp"], params)
    if latent_only:
        return {"latent": z}
    phi = decoder_fwd(z, params)
    pred_bqc = renderer_fwd(phi, input_batch["gt_coord"], input_batch["gt_cell"], params)

    B, _, H, W = input_batch["inp"].shape
    Co = pred_bqc.shape[-1]
    pred_patch = jnp.transpose(pred_bqc.reshape(B, H, W, Co), (0, 3, 1, 2))  # NCHW

    if compute_loss:
        recon = l1_loss(pred_patch, input_batch["gt"])
        loss_dict = {"recon_loss": recon, "loss": recon}
        output = {"pred": pred_patch, "latent": z}
        return output, loss_dict
    return {"pred": pred_patch, "latent": z}


# ----------------------------------------------------------------------------
# Deterministic parameter init (shapes implied by the module constructor)
# ----------------------------------------------------------------------------
def init_params(key, in_channels=1, z_channels=1, dec_out_channels=128,
                hidden=32, mlp_hidden=64):
    def conv_w(k, cin, cout):
        return jax.random.normal(k, (3, 3, cin, cout), jnp.float32) / jnp.sqrt(9 * cin)

    def lin_w(k, din, dout):
        return jax.random.normal(k, (din, dout), jnp.float32) / jnp.sqrt(din)

    ks = jax.random.split(key, 9)
    p = {}
    # Encoder
    p["e_w1"], p["e_b1"] = conv_w(ks[0], in_channels, hidden), jnp.zeros((hidden,), jnp.float32)
    p["e_w2"], p["e_b2"] = conv_w(ks[1], hidden, hidden), jnp.zeros((hidden,), jnp.float32)
    p["e_w3"], p["e_b3"] = conv_w(ks[2], hidden, z_channels), jnp.zeros((z_channels,), jnp.float32)
    # Decoder
    p["d_w1"], p["d_b1"] = conv_w(ks[3], z_channels, hidden), jnp.zeros((hidden,), jnp.float32)
    p["d_w2"], p["d_b2"] = conv_w(ks[4], hidden, dec_out_channels), jnp.zeros((dec_out_channels,), jnp.float32)
    # Renderer MLP (feature + 2 rel-coord + 2 cell -> hidden -> hidden -> in_channels)
    din = dec_out_channels + 4
    p["r_w1"], p["r_b1"] = lin_w(ks[5], din, mlp_hidden), jnp.zeros((mlp_hidden,), jnp.float32)
    p["r_w2"], p["r_b2"] = lin_w(ks[6], mlp_hidden, mlp_hidden), jnp.zeros((mlp_hidden,), jnp.float32)
    p["r_w3"], p["r_b3"] = lin_w(ks[7], mlp_hidden, in_channels), jnp.zeros((in_channels,), jnp.float32)
    return p


# ----------------------------------------------------------------------------
# Demo
# ----------------------------------------------------------------------------
if __name__ == "__main__":
    key = jax.random.PRNGKey(0)
    k_inp, k_gt, k_param = jax.random.split(key, 3)

    B, C, H, W = 2, 1, 16, 16        # small 'resolution' for the demo
    Q = H * W                        # one query per pixel

    inp = jax.random.normal(k_inp, (B, C, H, W), jnp.float32)
    gt = jax.random.normal(k_gt, (B, C, H, W), jnp.float32)

    # dense coordinate / cell grids in [-1, 1] (LIIF convention), flattened to (B, Q, 2)
    ys = (jnp.arange(H, dtype=jnp.float32) + 0.5) / H * 2.0 - 1.0
    xs = (jnp.arange(W, dtype=jnp.float32) + 0.5) / W * 2.0 - 1.0
    gy, gx = jnp.meshgrid(ys, xs, indexing="ij")
    coord = jnp.stack([gy, gx], axis=-1).reshape(1, Q, 2)
    coord = jnp.broadcast_to(coord, (B, Q, 2))
    cell = jnp.broadcast_to(jnp.asarray([[2.0 / H, 2.0 / W]], jnp.float32), (Q, 2))
    cell = jnp.broadcast_to(cell[None], (B, Q, 2))

    params = init_params(k_param, in_channels=C, z_channels=1, dec_out_channels=128)

    input_batch = {"inp": inp, "gt_coord": coord, "gt_cell": cell, "gt": gt}
    output, loss_dict = nfae_call(params, input_batch, compute_loss=True)

    jax.block_until_ready(output["pred"])
    jax.block_until_ready(output["latent"])
    jax.block_until_ready(loss_dict["loss"])

    assert output["pred"].shape == (B, C, H, W)
    assert output["latent"].shape == (B, 1, H // 2, W // 2)
    print("KERNEL_OK")
</pallas_src>

<mosaic_0001>
module attributes {stable_mosaic.version = 11 : i64} {
  func.func @_conv_s1_kernel(%arg0: i32, %arg1: i32, %arg2: memref<1x296x3xbf16, #tpu.memory_space<vmem>>, %arg3: memref<3x3x32xbf16, #tpu.memory_space<vmem>>, %arg4: memref<1x32xf32, #tpu.memory_space<vmem>>, %arg5: memref<1x256x32xbf16, #tpu.memory_space<vmem>>) attributes {dimension_semantics = [#tpu.dimension_semantics<parallel>, #tpu.dimension_semantics<parallel>], iteration_bounds = array<i64: 2, 1>, scalar_prefetch = 0 : i64, scratch_operands = 0 : i64, tpu.core_type = #tpu.core_type<tc>, window_params = [{transform_indices = @transform_0, window_bounds = array<i64: 1, 296, 3>}, {pipeline_mode = #tpu.pipeline_mode<synchronous>, transform_indices = @transform_1, window_bounds = array<i64: 3, 3, 32>}, {pipeline_mode = #tpu.pipeline_mode<synchronous>, transform_indices = @transform_2, window_bounds = array<i64: 1, 32>}, {transform_indices = @transform_3, window_bounds = array<i64: 1, 256, 32>}]} {
    %c256_i32 = arith.constant 256 : i32
    %0 = arith.muli %arg1, %c256_i32 : i32
    %c0 = arith.constant 0 : index
    %c0_0 = arith.constant 0 : index
    %c0_1 = arith.constant 0 : index
    %1 = vector.load %arg3[%c0, %c0_0, %c0_1] : memref<3x3x32xbf16, #tpu.memory_space<vmem>>, vector<1x3x32xbf16>
    %2 = vector.shape_cast %1 : vector<1x3x32xbf16> to vector<3x32xbf16>
    %c0_i32 = arith.constant 0 : i32
    %3 = arith.addi %0, %c0_i32 : i32
    %4 = tpu.assume_multiple %3, 8 : i32
    %c0_2 = arith.constant 0 : index
    %5 = arith.index_cast %4 : i32 to index
    %c0_3 = arith.constant 0 : index
    %6 = vector.load %arg2[%c0_2, %5, %c0_3] : memref<1x296x3xbf16, #tpu.memory_space<vmem>>, vector<1x256x3xbf16>
    %7 = vector.shape_cast %6 : vector<1x256x3xbf16> to vector<256x3xbf16>
    %8 = vector.extract_strided_slice %7 {offsets = [0, 0], sizes = [256, 1], strides = [1, 1]} : vector<256x3xbf16> to vector<256x1xbf16>
    %9 = arith.extf %8 : vector<256x1xbf16> to vector<256x1xf32>
    %10 = vector.extract_strided_slice %2 {offsets = [0, 0], sizes = [1, 32], strides = [1, 1]} : vector<3x32xbf16> to vector<1x32xbf16>
    %11 = arith.extf %10 : vector<1x32xbf16> to vector<1x32xf32>
    %12 = vector.broadcast %9 : vector<256x1xf32> to vector<256x32xf32>
    %13 = vector.broadcast %11 : vector<1x32xf32> to vector<256x32xf32>
    %14 = arith.mulf %12, %13 : vector<256x32xf32>
    %15 = vector.extract_strided_slice %7 {offsets = [0, 1], sizes = [256, 1], strides = [1, 1]} : vector<256x3xbf16> to vector<256x1xbf16>
    %16 = arith.extf %15 : vector<256x1xbf16> to vector<256x1xf32>
    %17 = vector.extract_strided_slice %2 {offsets = [1, 0], sizes = [1, 32], strides = [1, 1]} : vector<3x32xbf16> to vector<1x32xbf16>
    %18 = arith.extf %17 : vector<1x32xbf16> to vector<1x32xf32>
    %19 = vector.broadcast %16 : vector<256x1xf32> to vector<256x32xf32>
    %20 = vector.broadcast %18 : vector<1x32xf32> to vector<256x32xf32>
    %21 = arith.mulf %19, %20 : vector<256x32xf32>
    %22 = arith.addf %14, %21 : vector<256x32xf32>
    %23 = vector.extract_strided_slice %7 {offsets = [0, 2], sizes = [256, 1], strides = [1, 1]} : vector<256x3xbf16> to vector<256x1xbf16>
    %24 = arith.extf %23 : vector<256x1xbf16> to vector<256x1xf32>
    %25 = vector.extract_strided_slice %2 {offsets = [2, 0], sizes = [1, 32], strides = [1, 1]} : vector<3x32xbf16> to vector<1x32xbf16>
    %26 = arith.extf %25 : vector<1x32xbf16> to vector<1x32xf32>
    %27 = vector.broadcast %24 : vector<256x1xf32> to vector<256x32xf32>
    %28 = vector.broadcast %26 : vector<1x32xf32> to vector<256x32xf32>
    %29 = arith.mulf %27, %28 : vector<256x32xf32>
    %30 = arith.addf %22, %29 : vector<256x32xf32>
    %c1 = arith.constant 1 : index
    %c0_4 = arith.constant 0 : index
    %c0_5 = arith.constant 0 : index
    %31 = vector.load %arg3[%c1, %c0_4, %c0_5] : memref<3x3x32xbf16, #tpu.memory_space<vmem>>, vector<1x3x32xbf16>
    %32 = vector.shape_cast %31 : vector<1x3x32xbf16> to vector<3x32xbf16>
    %c16_i32 = arith.constant 16 : i32
    %33 = arith.addi %0, %c16_i32 : i32
    %34 = tpu.assume_multiple %33, 8 : i32
    %c0_6 = arith.constant 0 : index
    %35 = arith.index_cast %34 : i32 to index
    %c0_7 = arith.constant 0 : index
    %36 = vector.load %arg2[%c0_6, %35, %c0_7] : memref<1x296x3xbf16, #tpu.memory_space<vmem>>, vector<1x256x3xbf16>
    %37 = vector.shape_cast %36 : vector<1x256x3xbf16> to vector<256x3xbf16>
    %38 = vector.extract_strided_slice %37 {offsets = [0, 0], sizes = [256, 1], strides = [1, 1]} : vector<256x3xbf16> to vector<256x1xbf16>
    %39 = arith.extf %38 : vector<256x1xbf16> to vector<256x1xf32>
    %40 = vector.extract_strided_slice %32 {offsets = [0, 0], sizes = [1, 32], strides = [1, 1]} : vector<3x32xbf16> to vector<1x32xbf16>
    %41 = arith.extf %40 : vector<1x32xbf16> to vector<1x32xf32>
    %42 = vector.broadcast %39 : vector<256x1xf32> to vector<256x32xf32>
    %43 = vector.broadcast %41 : vector<1x32xf32> to vector<256x32xf32>
    %44 = arith.mulf %42, %43 : vector<256x32xf32>
    %45 = vector.extract_strided_slice %37 {offsets = [0, 1], sizes = [256, 1], strides = [1, 1]} : vector<256x3xbf16> to vector<256x1xbf16>
    %46 = arith.extf %45 : vector<256x1xbf16> to vector<256x1xf32>
    %47 = vector.extract_strided_slice %32 {offsets = [1, 0], sizes = [1, 32], strides = [1, 1]} : vector<3x32xbf16> to vector<1x32xbf16>
    %48 = arith.extf %47 : vector<1x32xbf16> to vector<1x32xf32>
    %49 = vector.broadcast %46 : vector<256x1xf32> to vector<256x32xf32>
    %50 = vector.broadcast %48 : vector<1x32xf32> to vector<256x32xf32>
    %51 = arith.mulf %49, %50 : vector<256x32xf32>
    %52 = arith.addf %44, %51 : vector<256x32xf32>
    %53 = vector.extract_strided_slice %37 {offsets = [0, 2], sizes = [256, 1], strides = [1, 1]} : vector<256x3xbf16> to vector<256x1xbf16>
    %54 = arith.extf %53 : vector<256x1xbf16> to vector<256x1xf32>
    %55 = vector.extract_strided_slice %32 {offsets = [2, 0], sizes = [1, 32], strides = [1, 1]} : vector<3x32xbf16> to vector<1x32xbf16>
    %56 = arith.extf %55 : vector<1x32xbf16> to vector<1x32xf32>
    %57 = vector.broadcast %54 : vector<256x1xf32> to vector<256x32xf32>
    %58 = vector.broadcast %56 : vector<1x32xf32> to vector<256x32xf32>
    %59 = arith.mulf %57, %58 : vector<256x32xf32>
    %60 = arith.addf %52, %59 : vector<256x32xf32>
    %61 = arith.addf %30, %60 : vector<256x32xf32>
    %c2 = arith.constant 2 : index
    %c0_8 = arith.constant 0 : index
    %c0_9 = arith.constant 0 : index
    %62 = vector.load %arg3[%c2, %c0_8, %c0_9] : memref<3x3x32xbf16, #tpu.memory_space<vmem>>, vector<1x3x32xbf16>
    %63 = vector.shape_cast %62 : vector<1x3x32xbf16> to vector<3x32xbf16>
    %c32_i32 = arith.constant 32 : i32
    %64 = arith.addi %0, %c32_i32 : i32
    %65 = tpu.assume_multiple %64, 8 : i32
    %c0_10 = arith.constant 0 : index
    %66 = arith.index_cast %65 : i32 to index
    %c0_11 = arith.constant 0 : index
    %67 = vector.load %arg2[%c0_10, %66, %c0_11] : memref<1x296x3xbf16, #tpu.memory_space<vmem>>, vector<1x256x3xbf16>
    %68 = vector.shape_cast %67 : vector<1x256x3xbf16> to vector<256x3xbf16>
    %69 = vector.extract_strided_slice %68 {offsets = [0, 0], sizes = [256, 1], strides = [1, 1]} : vector<256x3xbf16> to vector<256x1xbf16>
    %70 = arith.extf %69 : vector<256x1xbf16> to vector<256x1xf32>
    %71 = vector.extract_strided_slice %63 {offsets = [0, 0], sizes = [1, 32], strides = [1, 1]} : vector<3x32xbf16> to vector<1x32xbf16>
    %72 = arith.extf %71 : vector<1x32xbf16> to vector<1x32xf32>
    %73 = vector.broadcast %70 : vector<256x1xf32> to vector<256x32xf32>
    %74 = vector.broadcast %72 : vector<1x32xf32> to vector<256x32xf32>
    %75 = arith.mulf %73, %74 : vector<256x32xf32>
    %76 = vector.extract_strided_slice %68 {offsets = [0, 1], sizes = [256, 1], strides = [1, 1]} : vector<256x3xbf16> to vector<256x1xbf16>
    %77 = arith.extf %76 : vector<256x1xbf16> to vector<256x1xf32>
    %78 = vector.extract_strided_slice %63 {offsets = [1, 0], sizes = [1, 32], strides = [1, 1]} : vector<3x32xbf16> to vector<1x32xbf16>
    %79 = arith.extf %78 : vector<1x32xbf16> to vector<1x32xf32>
    %80 = vector.broadcast %77 : vector<256x1xf32> to vector<256x32xf32>
    %81 = vector.broadcast %79 : vector<1x32xf32> to vector<256x32xf32>
    %82 = arith.mulf %80, %81 : vector<256x32xf32>
    %83 = arith.addf %75, %82 : vector<256x32xf32>
    %84 = vector.extract_strided_slice %68 {offsets = [0, 2], sizes = [256, 1], strides = [1, 1]} : vector<256x3xbf16> to vector<256x1xbf16>
    %85 = arith.extf %84 : vector<256x1xbf16> to vector<256x1xf32>
    %86 = vector.extract_strided_slice %63 {offsets = [2, 0], sizes = [1, 32], strides = [1, 1]} : vector<3x32xbf16> to vector<1x32xbf16>
    %87 = arith.extf %86 : vector<1x32xbf16> to vector<1x32xf32>
    %88 = vector.broadcast %85 : vector<256x1xf32> to vector<256x32xf32>
    %89 = vector.broadcast %87 : vector<1x32xf32> to vector<256x32xf32>
    %90 = arith.mulf %88, %89 : vector<256x32xf32>
    %91 = arith.addf %83, %90 : vector<256x32xf32>
    %92 = arith.addf %61, %91 : vector<256x32xf32>
    %c0_12 = arith.constant 0 : index
    %c0_13 = arith.constant 0 : index
    %93 = vector.load %arg4[%c0_12, %c0_13] : memref<1x32xf32, #tpu.memory_space<vmem>>, vector<1x32xf32>
    %94 = vector.broadcast %93 : vector<1x32xf32> to vector<256x32xf32>
    %95 = arith.addf %92, %94 : vector<256x32xf32>
    %cst = arith.constant 0.000000e+00 : f32
    %96 = vector.broadcast %cst : f32 to vector<256x32xf32>
    %97 = arith.maximumf %95, %96 : vector<256x32xf32>
    %98 = arith.truncf %97 : vector<256x32xf32> to vector<256x32xbf16>
    %c0_14 = arith.constant 0 : index
    %c0_15 = arith.constant 0 : index
    %c0_16 = arith.constant 0 : index
    %99 = vector.load %arg5[%c0_14, %c0_15, %c0_16] : memref<1x256x32xbf16, #tpu.memory_space<vmem>>, vector<1x256x32xbf16>
    %100 = vector.shape_cast %99 : vector<1x256x32xbf16> to vector<256x32xbf16>
    %101 = vector.shape_cast %98 : vector<256x32xbf16> to vector<1x256x32xbf16>
    tpu.vector_store %arg5[%c0_14, %c0_15, %c0_16], %101 {strides = array<i32>} : memref<1x256x32xbf16, #tpu.memory_space<vmem>>, vector<1x256x32xbf16>,
    return
  }
  func.func @transform_0(%arg0: i32, %arg1: i32) -> (i32, i32, i32) {
    %c0_i32 = arith.constant 0 : i32
    %c0_i32_0 = arith.constant 0 : i32
    %c0_i32_1 = arith.constant 0 : i32
    return %arg0, %c0_i32, %c0_i32_0 : i32, i32, i32
  }
  func.func @transform_1(%arg0: i32, %arg1: i32) -> (i32, i32, i32) {
    %c0_i32 = arith.constant 0 : i32
    %c0_i32_0 = arith.constant 0 : i32
    %c0_i32_1 = arith.constant 0 : i32
    %c0_i32_2 = arith.constant 0 : i32
    return %c0_i32, %c0_i32_0, %c0_i32_1 : i32, i32, i32
  }
  func.func @transform_2(%arg0: i32, %arg1: i32) -> (i32, i32) {
    %c0_i32 = arith.constant 0 : i32
    %c0_i32_0 = arith.constant 0 : i32
    %c0_i32_1 = arith.constant 0 : i32
    return %c0_i32, %c0_i32_0 : i32, i32
  }
  func.func @transform_3(%arg0: i32, %arg1: i32) -> (i32, i32, i32) {
    %c0_i32 = arith.constant 0 : i32
    %c0_i32_0 = arith.constant 0 : i32
    return %arg0, %arg1, %c0_i32 : i32, i32, i32
  }
}

</mosaic_0001>

<bundles_post_ra>
// kernel: tpu_custom_call.1
= control target key start
LH: loop header
LB: loop body
LE: loop exit
PB: predicated region body
PF: predicated region fallthrough
CT: control target
= control target key end

     0   :  { %s3744_s12 = smov 0   ;;  %s3746_s13 = smov 0   ;;  %s5409_s0 = inlined_call_operand.vmem [shape: bf16[2,296,3], index: 0, kind: input, shape index: {}]   ;;  %s5410_s1 = inlined_call_operand.vmem [shape: bf16[3,3,32], index: 1, kind: input, shape index: {}]   ;;  %s5411_s2 = inlined_call_operand.vmem [shape: f32[1,32], index: 2, kind: input, shape index: {}]   ;;  %s5412_s3 = inlined_call_operand.vmem [shape: bf16[2,256,32], index: 3, kind: output, shape index: {}]  }
   0x1   :  { %s3748_s14 = smov 0  }
   0x2 LB: > { %s25_s15 = sadd.s32 1, %s3715_s13  ;;  %p2560_p0 = scmp.ge.s32.totalorder %s3719_s14, 1  ;;  %s3719_s14 = sphi %s3748_s14, %s13_s14   ;;  %s3715_s13 = sphi %s3746_s13, %s5730_s13   ;;  %s3711_s12 = sphi %s3744_s12, %s5729_s12  }
   0x3   : > { %p27_p1 = scmp.ge.s32.totalorder %s25_s15, 2  ;;  %p151_p2 = scmp.lt.s32.totalorder %s3719_s14, 3 }
   0x5   : > { %s5732_s15 = smov (%p27_p1, %s25_s15), 0  ;;  %p152_p3 = pnand %p2560_p0, %p151_p2 }
   0x7   : > { %155 = sbr.rel (%p152_p3) target bundleno = 477 (0x1dd), region = 32 }
   0xe   : > { %p179_p4 = scmp.lt.s32.totalorder %s3711_s12, 1  ;;  %v5415_v0 = vmov 0   ;;  %vm2436_vm0 = vcmask 257024  }
   0xf   : > { %2976 = vset.pattern.permute.xlu1 %v5415_v0  ;;  %2965 = vset.pattern.permute.xlu0 %v5415_v0 }
  0x10   : > { %s5734_s12 = smov (!%p179_p4, %s3711_s12), 1 }
  0x11   : > { %s2937_s16 = smul.u32 148, %s5734_s12  ;;  %s2665_s28 = sshll.u32 %s5734_s12, 7 }
  0x12   : > { %s5210_s4 = scalar_lea.vmem %s5412_s3, %s2665_s28 }
  0x13   : > { %s3770_s19 = scalar_lea.vmem %s5409_s0, %s2937_s16 }
  0x14   : > { %v2891_v1 = vld [vmem:[%s3770_s19 + $0x10] sm:$0xff]   ;;  %v2699_v2 = vld [vmem:[%s3770_s19] sm:$0xff]   ;;  %v2892_v3 = vld [vmem:[%s3770_s19 + $0x18] sm:$0xff]  }
  0x15   : > { %v2708_v4 = vunpack.c.l.bf16 %v2891_v1  ;;  %v2709_v5 = vunpack.c.h.bf16 %v2891_v1  ;;  %v2700_v6 = vunpack.c.l.bf16 %v2699_v2  ;;  %v2701_v7 = vunpack.c.h.bf16 %v2699_v2  ;;  %v2890_v8 = vld [vmem:[%s3770_s19 + $0x8] sm:$0xff]   ;;  %v2893_v14 = vld [vmem:[%s3770_s19 + $0x20] sm:$0xff]   ;;  %v2896_v23 = vld [vmem:[%s3770_s19 + $0x38] sm:$0xff]  }
  0x16   : > { %v2894_v9 = vld [vmem:[%s3770_s19 + $0x28] sm:$0xff]   ;;  %v2712_v10 = vunpack.c.l.bf16 %v2892_v3  ;;  %v2713_v11 = vunpack.c.h.bf16 %v2892_v3  ;;  %v2704_v12 = vunpack.c.l.bf16 %v2890_v8  ;;  %v2705_v13 = vunpack.c.h.bf16 %v2890_v8  ;;  %v2895_v24 = vld [vmem:[%s3770_s19 + $0x30] sm:$0xff]   ;;  %v2897_v32 = vld [vmem:[%s3770_s19 + $0x40] sm:$0xff]  }
  0x17   : > { %v3778_v15 = vpack.i.bf16 %v2709_v5, %v2708_v4  ;;  %v3780_v16 = vpack.i.bf16 %v2701_v7, %v2700_v6  ;;  %v2720_v17 = vunpack.c.l.bf16 %v2894_v9  ;;  %v2721_v18 = vunpack.c.h.bf16 %v2894_v9  ;;  %v2898_v31 = vld [vmem:[%s3770_s19 + $0x48] sm:$0xff]   ;;  %v2900_v39 = vld [vmem:[%s3770_s19 + $0x58] sm:$0xff]   ;;  %v2899_v40 = vld [vmem:[%s3770_s19 + $0x50] sm:$0xff]  }
  0x18   : > { %v3784_v19 = vpack.i.bf16 %v2713_v11, %v2712_v10  ;;  %v3786_v20 = vpack.i.bf16 %v2705_v13, %v2704_v12  ;;  %v2716_v21 = vunpack.c.l.bf16 %v2893_v14  ;;  %v2717_v22 = vunpack.c.h.bf16 %v2893_v14  ;;  %v2902_v47 = vld [vmem:[%s3770_s19 + $0x68] sm:$0xff]   ;;  %v2901_v48 = vld [vmem:[%s3770_s19 + $0x60] sm:$0xff]   ;;  %v2904_v55 = vld [vmem:[%s3770_s19 + $0x78] sm:$0xff]  }
  0x19   : > { %5450 = vst [vmem:[#allocation2_spill] sm:$0xff] %v3778_v15  ;;  %2978 = vperm.xlu1 %2976, %v3778_v15   ;;  %2967 = vperm.xlu0 %2965, %v3780_v16   ;;  %v2728_v25 = vunpack.c.l.bf16 %v2896_v23  ;;  %v2729_v26 = vunpack.c.h.bf16 %v2896_v23  ;;  %v3792_v27 = vpack.i.bf16 %v2721_v18, %v2720_v17  ;;  %v2724_v29 = vunpack.c.l.bf16 %v2895_v24  ;;  %v2903_v56 = vld [vmem:[%s3770_s19 + $0x70] sm:$0xff]   ;;  %v2920_v3 = vld [vmem:[%s3770_s19 + $0x80] sm:$0xff]  }
  0x1a   : > { %5451 = vst [vmem:[#allocation3_spill] sm:$0xff] %v3784_v19  ;;  %v3794_v28 = vpack.i.bf16 %v2717_v22, %v2716_v21  ;;  %v2725_v30 = vunpack.c.h.bf16 %v2895_v24  ;;  %v2736_v34 = vunpack.c.l.bf16 %v2898_v31  ;;  %v2737_v35 = vunpack.c.h.bf16 %v2898_v31 }
  0x1b   : > { %5452 = vst [vmem:[#allocation4_spill] sm:$0xff] %v3792_v27  ;;  %v3798_v33 = vpack.i.bf16 %v2729_v26, %v2728_v25  ;;  %v2732_v36 = vunpack.c.l.bf16 %v2897_v32  ;;  %v2733_v38 = vunpack.c.h.bf16 %v2897_v32  ;;  %v2744_v42 = vunpack.c.l.bf16 %v2900_v39 }
  0x1c   : > { %v3802_v37 = vpack.i.bf16 %v2725_v30, %v2724_v29  ;;  %v3806_v41 = vpack.i.bf16 %v2737_v35, %v2736_v34  ;;  %v2745_v44 = vunpack.c.h.bf16 %v2900_v39  ;;  %v2740_v45 = vunpack.c.l.bf16 %v2899_v40 }
  0x1d   : > { %2983 = vperm.xlu1 %2976, %v3784_v19   ;;  %2972 = vperm.xlu0 %2965, %v3786_v20   ;;  %5453 = vst [vmem:[#allocation5_spill] sm:$0xff] %v3798_v33  ;;  %v3810_v43 = vpack.i.bf16 %v2733_v38, %v2732_v36  ;;  %v2741_v46 = vunpack.c.h.bf16 %v2899_v40  ;;  %v2752_v49 = vunpack.c.l.bf16 %v2902_v47  ;;  %v2753_v50 = vunpack.c.h.bf16 %v2902_v47  ;;  %v2936_v36 = vld [vmem:[%s3770_s19 + $0x88] sm:$0xff]  }
  0x1e   : > { %5454 = vst [vmem:[#allocation6_spill] sm:$0xff] %v3806_v41  ;;  %v3816_v51 = vpack.i.bf16 %v2745_v44, %v2744_v42  ;;  %v2748_v53 = vunpack.c.l.bf16 %v2901_v48  ;;  %v2749_v54 = vunpack.c.h.bf16 %v2901_v48  ;;  %v2760_v58 = vunpack.c.l.bf16 %v2904_v55 }
  0x1f   : > { %v3818_v52 = vpack.i.bf16 %v2741_v46, %v2740_v45  ;;  %v3822_v57 = vpack.i.bf16 %v2753_v50, %v2752_v49  ;;  %v2761_v60 = vunpack.c.h.bf16 %v2904_v55  ;;  %v2756_v61 = vunpack.c.l.bf16 %v2903_v56 }
  0x20   : > { %5455 = vst [vmem:[#allocation7_spill] sm:$0xff] %v3816_v51  ;;  %v3826_v59 = vpack.i.bf16 %v2749_v54, %v2748_v53  ;;  %v2757_v62 = vunpack.c.h.bf16 %v2903_v56  ;;  %v5414_v2 = vmov 1   ;;  %v2824_v4 = vunpack.c.l.bf16 %v2920_v3 }
  0x21   : > { %2993 = vperm.xlu1 %2976, %v3792_v27   ;;  %2988 = vperm.xlu0 %2965, %v3794_v28   ;;  %v3830_v63 = vpack.i.bf16 %v2761_v60, %v2760_v58  ;;  %v2825_v5 = vunpack.c.h.bf16 %v2920_v3  ;;  %v5413_v7 = vmov 2   ;;  %v2888_v40 = vunpack.c.l.bf16 %v2936_v36  ;;  %v195_v60 = vld [vmem:[%s5410_s1] sm:$0x3]  ;;  %v2597_v3 = vld [vmem:[%s5410_s1 + $0x4] sm:$0x3] }
  0x22   : > { %v3832_v1 = vpack.i.bf16 %v2757_v62, %v2756_v61  ;;  %v2889_v42 = vunpack.c.h.bf16 %v2936_v36  ;;  %v425_v54 = vlaneseq  ;;  %v2564_v61 = vld [vmem:[%s5410_s1 + $0x2] sm:$0x3]  ;;  %v264_v36 = vunpack.c.l.bf16 %v195_v60 }
  0x23   : > { %v3851_v6 = vpack.i.bf16 %v2825_v5, %v2824_v4  ;;  %v2923_v5 = vld [vmem:[%s3770_s19 + $0x20] sm:$0xff]  }
  0x24   : > { %v3971_v46 = vpack.i.bf16 %v2889_v42, %v2888_v40  ;;  %v426_v58 = vshrl.u32 %v425_v54, 7  ;;  %v4010_v42 = vunpack.c.l.bf16 %v2564_v61 }
  0x25   : > { %3003 = vperm.xlu1 %2976, %v3798_v33   ;;  %2998 = vperm.xlu0 %2965, %v3802_v37   ;;  %5456 = vst [vmem:[#allocation8_spill] sm:$0xff] %v3851_v6 }
  0x26   : > { %5457 = vst [vmem:[#allocation9_spill] sm:$0xff] %v3971_v46  ;;  %v427_v40 = vsub.s32 0, %v426_v58  ;;  %v4012_v54 = vsub.s32 1, %v426_v58 }
  0x28   : > { %v4024_v60 = vrot.slane %v264_v36, %v427_v40  ;;  %v4027_v61 = vrot.slane %v4010_v42, %v427_v40 }
  0x29   : > { %3013 = vperm.xlu1 %2976, %v3806_v41   ;;  %3008 = vperm.xlu0 %2965, %v3810_v43  }
  0x2d   : > { %3023 = vperm.xlu1 %2976, %v3816_v51   ;;  %3018 = vperm.xlu0 %2965, %v3818_v52  }
  0x31   : > { %3033 = vperm.xlu1 %2976, %v3822_v57   ;;  %3028 = vperm.xlu0 %2965, %v3826_v59  }
  0x35   : > { %3043 = vperm.xlu1 %2976, %v3830_v63   ;;  %3038 = vperm.xlu0 %2965, %v3832_v1  }
  0x39   : > { %3047 = vset.pattern.permute.xlu1 %v5414_v2  ;;  %3135 = vperm.xlu0 %2965, %v3786_v20  }
  0x3a   : > { %3049 = vperm.xlu1 %3047, %v3786_v20  }
  0x3d   : > { %3151 = vperm.xlu0 %2965, %v3794_v28  }
  0x3e   : > { %3054 = vperm.xlu1 %3047, %v3778_v15  }
  0x41   : > { %3161 = vperm.xlu0 %2965, %v3802_v37  }
  0x42   : > { %3059 = vperm.xlu1 %3047, %v3794_v28  }
  0x45   : > { %3171 = vperm.xlu0 %2965, %v3810_v43  }
  0x46   : > { %3064 = vperm.xlu1 %3047, %v3802_v37  }
  0x49   : > { %3181 = vperm.xlu0 %2965, %v3818_v52  }
  0x4a   : > { %3069 = vperm.xlu1 %3047, %v3810_v43  }
  0x4d   : > { %3191 = vperm.xlu0 %2965, %v3826_v59  }
  0x4e   : > { %3074 = vperm.xlu1 %3047, %v3818_v52  }
  0x51   : > { %3201 = vperm.xlu0 %2965, %v3832_v1  }
  0x52   : > { %3079 = vperm.xlu1 %3047, %v3826_v59  }
  0x55   : > { %3211 = vperm.xlu0 %2965, %v3851_v6  }
  0x56   : > { %3084 = vperm.xlu1 %3047, %v3832_v1  }
  0x59   : > { %3309 = vperm.xlu0 %2965, %v3784_v19  }
  0x5a   : > { %3088 = vset.pattern.permute.xlu1 %v5413_v7 }
  0x5b   : > { %3090 = vperm.xlu1 %3088, %v3780_v16  }
  0x5d   : > { %3324 = vperm.xlu0 %2965, %v3802_v37  }
  0x5f   : > { %3095 = vperm.xlu1 %3088, %v3778_v15  }
  0x61   : > { %3334 = vperm.xlu0 %2965, %v3810_v43  }
  0x63   : > { %3100 = vperm.xlu1 %3088, %v3784_v19  }
  0x65   : > { %3344 = vperm.xlu0 %2965, %v3818_v52  }
  0x67   : > { %3105 = vperm.xlu1 %3088, %v3792_v27  }
  0x69   : > { %3354 = vperm.xlu0 %2965, %v3826_v59  }
  0x6b   : > { %3110 = vperm.xlu1 %3088, %v3798_v33  }
  0x6d   : > { %3364 = vperm.xlu0 %2965, %v3832_v1  }
  0x6f   : > { %3115 = vperm.xlu1 %3088, %v3806_v41  }
  0x71   : > { %3374 = vperm.xlu0 %2965, %v3851_v6  }
  0x73   : > { %3120 = vperm.xlu1 %3088, %v3816_v51  }
  0x75   : > { %3378 = vset.pattern.permute.xlu0 %v5414_v2 }
  0x76   : > { %3380 = vperm.xlu0 %3378, %v3780_v16  }
  0x77   : > { %3125 = vperm.xlu1 %3088, %v3822_v57  }
  0x7a   : > { %3385 = vperm.xlu0 %3378, %v3784_v19  }
  0x7b   : > { %3130 = vperm.xlu1 %3088, %v3830_v63  }
  0x7e   : > { %3390 = vperm.xlu0 %3378, %v3792_v27  }
  0x7f   : > { %3139 = vset.pattern.permute.xlu1 %v5415_v0 }
  0x80   : > { %3141 = vperm.xlu1 %3139, %v3778_v15  }
  0x82   : > { %3395 = vperm.xlu0 %3378, %v3798_v33  }
  0x84   : > { %3146 = vperm.xlu1 %3139, %v3784_v19  }
  0x86   : > { %3400 = vperm.xlu0 %3378, %v3806_v41  }
  0x88   : > { %3156 = vperm.xlu1 %3139, %v3792_v27  }
  0x8a   : > { %3405 = vperm.xlu0 %3378, %v3816_v51  }
  0x8c   : > { %3166 = vperm.xlu1 %3139, %v3798_v33  }
  0x8e   : > { %3410 = vperm.xlu0 %3378, %v3822_v57  }
  0x90   : > { %3176 = vperm.xlu1 %3139, %v3806_v41  }
  0x92   : > { %3415 = vperm.xlu0 %3378, %v3830_v63  }
  0x94   : > { %3186 = vperm.xlu1 %3139, %v3816_v51  }
  0x96   : > { %3420 = vperm.xlu0 %3378, %v3778_v15  }
  0x98   : > { %v3890_v8 = vpop.permute.xlu1 %2978  ;;  %3196 = vperm.xlu1 %3139, %v3822_v57   ;;  %v3893_v9 = vpop.permute.xlu0 %2967 }
  0x9a   : > { %3425 = vperm.xlu0 %3378, %v3792_v27  }
  0x9c   : > { %v3896_v10 = vpop.permute.xlu1 %2983  ;;  %3206 = vperm.xlu1 %3139, %v3830_v63   ;;  %v3899_v11 = vpop.permute.xlu0 %2972 }
  0x9e   : > { %3430 = vperm.xlu0 %3378, %v3798_v33  }
  0xa0   : > { %v3902_v12 = vpop.permute.xlu1 %2993  ;;  %3215 = vset.pattern.permute.xlu1 %v5414_v2  ;;  %v3905_v13 = vpop.permute.xlu0 %2988  ;;  %v4016_v2 = vsub.s32 2, %v426_v58 }
  0xa1   : > { %3217 = vperm.xlu1 %3215, %v3786_v20  }
  0xa2   : > { %3435 = vperm.xlu0 %3378, %v3806_v41  }
  0xa4   : > { %v3909_v14 = vpop.permute.xlu1 %3003  ;;  %v3911_v16 = vpop.permute.xlu0 %2998 }
  0xa5   : > { %3222 = vperm.xlu1 %3215, %v3784_v19  }
  0xa6   : > { %3440 = vperm.xlu0 %3378, %v3816_v51  }
  0xa8   : > { %v3915_v17 = vpop.permute.xlu1 %3013  ;;  %v3917_v18 = vpop.permute.xlu0 %3008 }
  0xa9   : > { %3227 = vperm.xlu1 %3215, %v3794_v28  }
  0xaa   : > { %3445 = vperm.xlu0 %3378, %v3822_v57  }
  0xac   : > { %v3921_v21 = vpop.permute.xlu1 %3023  ;;  %v3923_v22 = vpop.permute.xlu0 %3018 }
  0xad   : > { %3232 = vperm.xlu1 %3215, %v3802_v37  }
  0xae   : > { %3450 = vperm.xlu0 %3378, %v3830_v63  }
  0xb0   : > { %v3927_v23 = vpop.permute.xlu1 %3033  ;;  %v3929_v24 = vpop.permute.xlu0 %3028 }
  0xb1   : > { %3237 = vperm.xlu1 %3215, %v3810_v43  }
  0xb2   : > { %3460 = vperm.xlu0 %3378, %v3778_v15  }
  0xb4   : > { %v3933_v25 = vpop.permute.xlu1 %3043  ;;  %v3935_v26 = vpop.permute.xlu0 %3038 }
  0xb5   : > { %3242 = vperm.xlu1 %3215, %v3818_v52  }
  0xb6   : > { %3476 = vperm.xlu0 %3378, %v3792_v27  }
  0xb8   : > { %v3939_v29 = vpop.permute.xlu0 %3135 }
  0xb9   : > { %v3941_v30 = vpop.permute.xlu1 %3049  ;;  %3247 = vperm.xlu1 %3215, %v3826_v59  }
  0xba   : > { %3486 = vperm.xlu0 %3378, %v3798_v33  }
  0xbc   : > { %v3945_v31 = vpop.permute.xlu0 %3151 }
  0xbd   : > { %v3947_v32 = vpop.permute.xlu1 %3054  ;;  %3252 = vperm.xlu1 %3215, %v3832_v1  }
  0xbe   : > { %3496 = vperm.xlu0 %3378, %v3806_v41  }
  0xc0   : > { %v3951_v34 = vpop.permute.xlu0 %3161 }
  0xc1   : > { %v3953_v35 = vpop.permute.xlu1 %3059  ;;  %3257 = vperm.xlu1 %3215, %v3851_v6   ;;  %v5472_v6 = vmov 0  }
  0xc2   : > { %3506 = vperm.xlu0 %3378, %v3816_v51  }
  0xc4   : > { %v3958_v38 = vpop.permute.xlu0 %3171 }
  0xc5   : > { %v3960_v39 = vpop.permute.xlu1 %3064  ;;  %3261 = vset.pattern.permute.xlu1 %v5413_v7 }
  0xc6   : > { %3263 = vperm.xlu1 %3261, %v3778_v15   ;;  %3516 = vperm.xlu0 %3378, %v3822_v57  }
  0xc8   : > { %v3965_v44 = vpop.permute.xlu0 %3181 }
  0xc9   : > { %v3967_v45 = vpop.permute.xlu1 %3069 }
  0xca   : > { %3268 = vperm.xlu1 %3261, %v3784_v19   ;;  %3526 = vperm.xlu0 %3378, %v3830_v63   ;;  %v4036_v19 = vrot.slane %v264_v36, %v4016_v2 }
  0xcc   : > { %v3973_v47 = vpop.permute.xlu0 %3191  ;;  %5468 = vst [vmem:[#allocation20_spill] sm:$0xff] %v4036_v19  ;;  %v2969_v19 = vunpack.i.l.bf16 %v3893_v9 }
  0xcd   : > { %v3975_v48 = vpop.permute.xlu1 %3074 }
  0xce   : > { %3273 = vperm.xlu1 %3261, %v3792_v27   ;;  %3536 = vperm.xlu0 %3378, %v3971_v46  }
  0xd0   : > { %v3979_v49 = vpop.permute.xlu0 %3201 }
  0xd1   : > { %5458 = vst [vmem:[#allocation10_spill] sm:$0xff] %v3979_v49  ;;  %v3981_v50 = vpop.permute.xlu1 %3079 }
  0xd2   : > { %3278 = vperm.xlu1 %3261, %v3798_v33   ;;  %3540 = vset.pattern.permute.xlu0 %v5413_v7  ;;  %v4014_v7 = vunpack.c.l.bf16 %v2597_v3  ;;  %v4030_v3 = vrot.slane %v264_v36, %v4012_v54  ;;  %v2970_v36 = vunpack.i.h.bf16 %v3893_v9  ;;  %v4068_v9 = vrot.slane %v4010_v42, %v4012_v54 }
  0xd3   : > { %3542 = vperm.xlu0 %3540, %v3786_v20  }
  0xd4   : > { %v3986_v53 = vpop.permute.xlu0 %3211  ;;  %5464 = vst [vmem:[#allocation16_spill] sm:$0xff] %v4014_v7  ;;  %v4033_v58 = vrot.slane %v4014_v7, %v427_v40  ;;  %v2980_v40 = vunpack.i.l.bf16 %v3890_v8  ;;  %5476 = vst [vmem:[#allocation27_spill] sm:$0xff] %v4068_v9  ;;  %v2990_v9 = vunpack.i.l.bf16 %v3905_v13 }
  0xd5   : > { %5459 = vst [vmem:[#allocation11_spill] sm:$0xff] %v3986_v53  ;;  %v3988_v55 = vpop.permute.xlu1 %3084  ;;  %v2981_v53 = vunpack.i.h.bf16 %v3890_v8 }
  0xd6   : > { %5460 = vst [vmem:[#allocation12_spill] sm:$0xff] %v3988_v55  ;;  %3283 = vperm.xlu1 %3261, %v3806_v41   ;;  %5467 = vst [vmem:[#allocation19_spill] sm:$0xff] %v4033_v58 }
  0xd7   : > { %3547 = vperm.xlu0 %3540, %v3794_v28   ;;  %v4062_v8 = vmul.f32 %v2981_v53, %v4024_v60  ;;  %v2995_v53 = vunpack.i.l.bf16 %v3902_v12 }
  0xd8   : > { %v3992_v56 = vpop.permute.xlu0 %3309 }
  0xd9   : > { %5461 = vst [vmem:[#allocation13_spill] sm:$0xff] %v3992_v56  ;;  %v2837_v56 = vunpack.c.h.bf16 %v2923_v5 }
  0xda   : > { %3288 = vperm.xlu1 %3261, %v3816_v51   ;;  %v4001_v62 = vpop.permute.xlu1 %3090 }
  0xdb   : > { %5462 = vst [vmem:[#allocation14_spill] sm:$0xff] %v4001_v62  ;;  %3552 = vperm.xlu0 %3540, %v3802_v37   ;;  %v2836_v62 = vunpack.c.l.bf16 %v2923_v5 }
  0xdc   : > { %v4007_v4 = vpop.permute.xlu0 %3324 }
  0xdd   : > { %5463 = vst [vmem:[#allocation15_spill] sm:$0xff] %v4007_v4  ;;  %v4042_v5 = vpack.i.bf16 %v2837_v56, %v2836_v62  ;;  %v2986_v62 = vunpack.i.h.bf16 %v3896_v10 }
  0xde   : > { %3293 = vperm.xlu1 %3261, %v3822_v57   ;;  %v4019_v0 = vpop.permute.xlu1 %3095 }
  0xdf   : > { %5465 = vst [vmem:[#allocation17_spill] sm:$0xff] %v4019_v0  ;;  %3557 = vperm.xlu0 %3540, %v3810_v43   ;;  %5470 = vst [vmem:[#allocation22_spill] sm:$0xff] %v4042_v5 }
  0xe0   : > { %v4022_v4 = vpop.permute.xlu0 %3334 }
  0xe1   : > { %5466 = vst [vmem:[#allocation18_spill] sm:$0xff] %v4022_v4 }
  0xe2   : > { %3298 = vperm.xlu1 %3261, %v3830_v63   ;;  %v4039_v0 = vpop.permute.xlu1 %3100 }
  0xe3   : > { %5469 = vst [vmem:[#allocation21_spill] sm:$0xff] %v4039_v0  ;;  %3562 = vperm.xlu0 %3540, %v3818_v52  }
  0xe4   : > { %v4044_v4 = vpop.permute.xlu0 %3344 }
  0xe5   : > { %5471 = vst [vmem:[#allocation23_spill] sm:$0xff] %v4044_v4  ;;  %v2985_v4 = vunpack.i.l.bf16 %v3896_v10  ;;  %v4077_v10 = vmul.f32 %v2969_v19, %v4024_v60 }
  0xe6   : > { %3302 = vset.pattern.permute.xlu1 %v5472_v6  ;;  %v4048_v49 = vpop.permute.xlu1 %3105  ;;  %v2975_v6 = vunpack.i.h.bf16 %v3899_v11 }
  0xe7   : > { %5473 = vst [vmem:[#allocation24_spill] sm:$0xff] %v4048_v49  ;;  %3304 = vperm.xlu1 %3302, %v3778_v15   ;;  %3567 = vperm.xlu0 %3540, %v3826_v59   ;;  %v2974_v49 = vunpack.i.l.bf16 %v3899_v11  ;;  %v4071_v15 = vmul.f32 %v2980_v40, %v4024_v60  ;;  %5478 = vst [vmem:[#allocation29_spill] sm:$0xff] %v4077_v10  ;;  %v2996_v11 = vunpack.i.h.bf16 %v3902_v12  ;;  %v3006_v40 = vunpack.i.h.bf16 %v3909_v14 }
  0xe8   : > { %v4055_v56 = vpop.permute.xlu0 %3354  ;;  %v4092_v19 = vmul.f32 %v2985_v4, %v4024_v60  ;;  %v3005_v12 = vunpack.i.l.bf16 %v3909_v14  ;;  %v3015_v4 = vunpack.i.l.bf16 %v3915_v17  ;;  %v4115_v14 = vmul.f32 %v2995_v53, %v4024_v60 }
  0xe9   : > { %5474 = vst [vmem:[#allocation25_spill] sm:$0xff] %v4055_v56  ;;  %v4074_v56 = vmul.f32 %v2970_v36, %v4024_v60  ;;  %v4089_v36 = vmul.f32 %v2986_v62, %v4024_v60  ;;  %v4098_v10 = vmul.f32 %v2974_v49, %v4024_v60  ;;  %v4107_v62 = vmul.f32 %v2996_v11, %v4024_v60 }
  0xea   : > { %v4064_v0 = vpop.permute.xlu1 %3110  ;;  %5481 = vst [vmem:[#allocation32_spill] sm:$0xff] %v4092_v19  ;;  %v3010_v49 = vunpack.i.l.bf16 %v3917_v18  ;;  %5483 = vst [vmem:[#allocation34_spill] sm:$0xff] %v4115_v14  ;;  %v4121_v19 = vmul.f32 %v2990_v9, %v4024_v60  ;;  %v4124_v11 = vmul.f32 %v3006_v40, %v4024_v60  ;;  %v3020_v53 = vunpack.i.l.bf16 %v3923_v22 }
  0xeb   : > { %5475 = vst [vmem:[#allocation26_spill] sm:$0xff] %v4064_v0  ;;  %5477 = vst [vmem:[#allocation28_spill] sm:$0xff] %v4074_v56  ;;  %3314 = vperm.xlu1 %3302, %v4042_v5   ;;  %3572 = vperm.xlu0 %3540, %v3832_v1   ;;  %v2991_v0 = vunpack.i.h.bf16 %v3905_v13  ;;  %v4095_v56 = vmul.f32 %v2975_v6, %v4024_v60  ;;  %v3001_v13 = vunpack.i.h.bf16 %v3911_v16  ;;  %v3000_v5 = vunpack.i.l.bf16 %v3911_v16 }
  0xec   : > { %v4086_v58 = vpop.permute.xlu0 %3364  ;;  %5480 = vst [vmem:[#allocation31_spill] sm:$0xff] %v4089_v36  ;;  %5482 = vst [vmem:[#allocation33_spill] sm:$0xff] %v4107_v62  ;;  %v3011_v6 = vunpack.i.h.bf16 %v3917_v18  ;;  %v3026_v18 = vunpack.i.h.bf16 %v3921_v21  ;;  %v3025_v62 = vunpack.i.l.bf16 %v3921_v21  ;;  %v4133_v14 = vmul.f32 %v3005_v12, %v4024_v60 }
  0xed   : > { %5479 = vst [vmem:[#allocation30_spill] sm:$0xff] %v4086_v58  ;;  %v3016_v58 = vunpack.i.h.bf16 %v3915_v17  ;;  %v4118_v16 = vmul.f32 %v2991_v0, %v4024_v60  ;;  %5484 = vst [vmem:[#allocation35_spill] sm:$0xff] %v4124_v11  ;;  %v4136_v0 = vmul.f32 %v3001_v13, %v4024_v60  ;;  %v4139_v9 = vmul.f32 %v3000_v5, %v4024_v60 }
  0xee   : > { %v4104_v55 = vpop.permute.xlu1 %3115  ;;  %5485 = vst [vmem:[#allocation36_spill] sm:$0xff] %v4133_v14  ;;  %v4147_v21 = vmul.f32 %v3015_v4, %v4024_v60  ;;  %v4150_v36 = vmul.f32 %v3011_v6, %v4024_v60  ;;  %v3036_v12 = vunpack.i.h.bf16 %v3927_v23  ;;  %v3031_v5 = vunpack.i.h.bf16 %v3929_v24 }
  0xef   : > { %3319 = vperm.xlu1 %3302, %v3792_v27   ;;  %3577 = vperm.xlu0 %3540, %v3786_v20   ;;  %v3021_v20 = vunpack.i.h.bf16 %v3923_v22  ;;  %v4142_v40 = vmul.f32 %v3016_v58, %v4024_v60  ;;  %v4153_v22 = vmul.f32 %v3010_v49, %v4024_v60  ;;  %v3035_v58 = vunpack.i.l.bf16 %v3927_v23 }
  0xf0   : > { %v4126_v17 = vpop.permute.xlu0 %3374  ;;  %5487 = vst [vmem:[#allocation38_spill] sm:$0xff] %v4147_v21  ;;  %v3030_v13 = vunpack.i.l.bf16 %v3929_v24  ;;  %v4162_v4 = vmul.f32 %v3026_v18, %v4024_v60  ;;  %v4165_v6 = vmul.f32 %v3025_v62, %v4024_v60  ;;  %v4171_v21 = vmul.f32 %v3020_v53, %v4024_v60 }
  0xf1   : > { %5486 = vst [vmem:[#allocation37_spill] sm:$0xff] %v4142_v40  ;;  %v4168_v49 = vmul.f32 %v3021_v20, %v4024_v60  ;;  %v3045_v23 = vunpack.i.l.bf16 %v3933_v25  ;;  %v3041_v24 = vunpack.i.h.bf16 %v3935_v26  ;;  %v4181_v18 = vmul.f32 %v3036_v12, %v4024_v60 }
  0xf2   : > { %v4144_v11 = vpop.permute.xlu1 %3120  ;;  %5488 = vst [vmem:[#allocation39_spill] sm:$0xff] %v4162_v4  ;;  %5489 = vst [vmem:[#allocation40_spill] sm:$0xff] %v4165_v6  ;;  %v3040_v62 = vunpack.i.l.bf16 %v3935_v26  ;;  %v3052_v20 = vunpack.i.h.bf16 %v3941_v30  ;;  %v3051_v53 = vunpack.i.l.bf16 %v3941_v30  ;;  %v4189_v6 = vmul.f32 %v3035_v58, %v4024_v60 }
  0xf3   : > { %3329 = vperm.xlu1 %3302, %v3798_v33   ;;  %3582 = vperm.xlu0 %3540, %v3794_v28   ;;  %v3046_v28 = vunpack.i.h.bf16 %v3933_v25  ;;  %5490 = vst [vmem:[#allocation41_spill] sm:$0xff] %v4181_v18  ;;  %v4192_v25 = vmul.f32 %v3031_v5, %v4024_v60  ;;  %v4195_v4 = vmul.f32 %v3030_v13, %v4024_v60  ;;  %v3057_v12 = vunpack.i.h.bf16 %v3947_v32 }
  0xf4   : > { %5491 = vst [vmem:[#allocation42_spill] sm:$0xff] %v4189_v6  ;;  %v3138_v26 = vunpack.i.h.bf16 %v3939_v29  ;;  %v3137_v18 = vunpack.i.l.bf16 %v3939_v29  ;;  %v3056_v30 = vunpack.i.l.bf16 %v3947_v32  ;;  %v4205_v58 = vrot.slane %v4014_v7, %v4012_v54 }
  0xf5   : > { %v4173_v40 = vpop.permute.xlu0 %3380  ;;  %v4208_v5 = vmul.f32 %v3046_v28, %v4024_v60  ;;  %v4211_v13 = vmul.f32 %v3045_v23, %v4024_v60  ;;  %v4214_v6 = vmul.f32 %v3041_v24, %v4024_v60  ;;  %v4219_v29 = vmul.f32 %v3040_v62, %v4024_v60 }
  0xf6   : > { %v4178_v14 = vpop.permute.xlu1 %3125  ;;  %5492 = vst [vmem:[#allocation43_spill] sm:$0xff] %v4205_v58  ;;  %v596_v32 = vmul.f32 %v3052_v20, %v4030_v3  ;;  %v595_v27 = vmul.f32 %v3051_v53, %v4030_v3  ;;  %v3154_v54 = vunpack.i.h.bf16 %v3945_v31  ;;  %v3153_v28 = vunpack.i.l.bf16 %v3945_v31 }
  0xf7   : > { %3339 = vperm.xlu1 %3302, %v3806_v41   ;;  %3587 = vperm.xlu0 %3540, %v3802_v37   ;;  %v598_v23 = vmul.f32 %v3057_v12, %v4030_v3  ;;  %v3061_v24 = vunpack.i.l.bf16 %v3953_v35  ;;  %v4230_v58 = vmul.f32 %v3138_v26, %v4027_v61  ;;  %v4233_v60 = vmul.f32 %v3137_v18, %v4027_v61 }
  0xf8   : > { %v597_v62 = vmul.f32 %v3056_v30, %v4030_v3  ;;  %v3062_v20 = vunpack.i.h.bf16 %v3953_v35  ;;  %v3164_v7 = vunpack.i.h.bf16 %v3951_v34  ;;  %v3163_v31 = vunpack.i.l.bf16 %v3951_v34 }
  0xf9   : > { %v4201_v41 = vpop.permute.xlu0 %3385  ;;  %v3066_v12 = vunpack.i.l.bf16 %v3960_v39  ;;  %v4246_v26 = vadd.f32 %v596_v32, %v4095_v56  ;;  %v4249_v18 = vmul.f32 %v3154_v54, %v4027_v61  ;;  %v3067_v30 = vunpack.i.h.bf16 %v3960_v39 }
  0xfa   : > { %v4216_v33 = vpop.permute.xlu1 %3130  ;;  %v4257_v34 = vmul.f32 %v3153_v28, %v4027_v61  ;;  %v601_v56 = vmul.f32 %v3061_v24, %v4030_v3  ;;  %v602_v32 = vmul.f32 %v3062_v20, %v4030_v3  ;;  %v3174_v39 = vunpack.i.h.bf16 %v3958_v38 }
  0xfb   : > { %3349 = vperm.xlu1 %3302, %v3816_v51   ;;  %3592 = vperm.xlu0 %3540, %v3810_v43   ;;  %v4243_v51 = vadd.f32 %v595_v27, %v4098_v10  ;;  %5494 = vst [vmem:[#allocation45_spill] sm:$0xff] %v4246_v26  ;;  %v4260_v27 = vadd.f32 %v598_v23, %v4062_v8  ;;  %v3173_v54 = vunpack.i.l.bf16 %v3958_v38  ;;  %v3071_v24 = vunpack.i.l.bf16 %v3967_v45 }
  0xfc   : > { %v4264_v10 = vadd.f32 %v597_v62, %v4071_v15  ;;  %v4275_v28 = vmul.f32 %v3163_v31, %v4027_v61  ;;  %v605_v8 = vmul.f32 %v3066_v12, %v4030_v3  ;;  %v606_v23 = vmul.f32 %v3067_v30, %v4030_v3 }
  0xfd   : > { %v4237_v53 = vpop.permute.xlu0 %3390  ;;  %5493 = vst [vmem:[#allocation44_spill] sm:$0xff] %v4243_v51  ;;  %v4272_v51 = vmul.f32 %v3164_v7, %v4027_v61  ;;  %v3072_v15 = vunpack.i.h.bf16 %v3967_v45  ;;  %v4287_v7 = vrot.slane %v4010_v42, %v4016_v2  ;;  %v4290_v38 = vadd.f32 %v601_v56, %v4121_v19 }
  0xfe   : > { %5496 = vst [vmem:[#allocation47_spill] sm:$0xff] %v4275_v28  ;;  %v3184_v20 = vunpack.i.h.bf16 %v3965_v44  ;;  %v3183_v31 = vunpack.i.l.bf16 %v3965_v44  ;;  %v3076_v12 = vunpack.i.l.bf16 %v3975_v48  ;;  %v4296_v45 = vadd.f32 %v602_v32, %v4118_v16 }
  0xff   : > { %3359 = vperm.xlu1 %3302, %v3822_v57   ;;  %v4253_v35 = vpop.permute.xlu1 %3141  ;;  %3597 = vperm.xlu0 %3540, %v3818_v52   ;;  %5495 = vst [vmem:[#allocation46_spill] sm:$0xff] %v4272_v51  ;;  %5497 = vst [vmem:[#allocation48_spill] sm:$0xff] %v4290_v38  ;;  %v4299_v30 = vmul.f32 %v3174_v39, %v4027_v61  ;;  %v4302_v51 = vmul.f32 %v3173_v54, %v4027_v61  ;;  %v3077_v42 = vunpack.i.h.bf16 %v3975_v48 }
 0x100   : > { %5498 = vst [vmem:[#allocation49_spill] sm:$0xff] %v4296_v45  ;;  %v4308_v19 = vadd.f32 %v605_v8, %v4139_v9  ;;  %v3082_v44 = vunpack.i.h.bf16 %v3981_v50  ;;  %v3081_v56 = vunpack.i.l.bf16 %v3981_v50  ;;  %v4313_v16 = vadd.f32 %v606_v23, %v4136_v0  ;;  %v5506_v45 = vld [vmem:[#allocation10_spill] sm:$0xff] }
 0x101   : > { %v4269_v26 = vpop.permute.xlu0 %3395  ;;  %5499 = vst [vmem:[#allocation50_spill] sm:$0xff] %v4299_v30  ;;  %5500 = vst [vmem:[#allocation51_spill] sm:$0xff] %v4302_v51  ;;  %v610_v32 = vmul.f32 %v3072_v15, %v4030_v3  ;;  %v609_v39 = vmul.f32 %v3071_v24, %v4030_v3  ;;  %v3194_v54 = vunpack.i.h.bf16 %v3973_v47  ;;  %v4323_v9 = vmul.f32 %v3184_v20, %v4027_v61  ;;  %v5505_v15 = vld [vmem:[#allocation12_spill] sm:$0xff] }
 0x102   : > { %5501 = vst [vmem:[#allocation52_spill] sm:$0xff] %v4308_v19  ;;  %5502 = vst [vmem:[#allocation53_spill] sm:$0xff] %v4313_v16  ;;  %v4326_v50 = vmul.f32 %v3183_v31, %v4027_v61  ;;  %v3193_v0 = vunpack.i.l.bf16 %v3973_v47  ;;  %v613_v8 = vmul.f32 %v3076_v12, %v4030_v3  ;;  %v614_v23 = vmul.f32 %v3077_v42, %v4030_v3  ;;  %v5511_v30 = vld [vmem:[#allocation8_spill] sm:$0xff] }
 0x103   : > { %3369 = vperm.xlu1 %3302, %v3830_v63   ;;  %v4282_v62 = vpop.permute.xlu1 %3146  ;;  %3602 = vperm.xlu0 %3540, %v3826_v59   ;;  %5503 = vst [vmem:[#allocation54_spill] sm:$0xff] %v4323_v9  ;;  %v3087_v24 = vunpack.i.h.bf16 %v5505_v15  ;;  %v3086_v16 = vunpack.i.l.bf16 %v5505_v15  ;;  %v3204_v38 = vunpack.i.h.bf16 %v5506_v45  ;;  %v3203_v20 = vunpack.i.l.bf16 %v5506_v45 }
 0x104   : > { %5504 = vst [vmem:[#allocation55_spill] sm:$0xff] %v4326_v50  ;;  %v618_v9 = vmul.f32 %v3082_v44, %v4030_v3  ;;  %v617_v31 = vmul.f32 %v3081_v56, %v4030_v3  ;;  %v4340_v47 = vadd.f32 %v609_v39, %v4153_v22  ;;  %v4343_v12 = vadd.f32 %v610_v32, %v4150_v36  ;;  %v5514_v22 = vld [vmem:[#allocation11_spill] sm:$0xff] }
 0x105   : > { %v4305_v28 = vpop.permute.xlu0 %3400  ;;  %v4346_v42 = vmul.f32 %v3194_v54, %v4027_v61  ;;  %v5510_v15 = vmov 1   ;;  %v4353_v45 = vmul.f32 %v3193_v0, %v4027_v61  ;;  %v4356_v44 = vadd.f32 %v613_v8, %v4171_v21  ;;  %v5515_v32 = vld [vmem:[#allocation3_spill] sm:$0xff] }
 0x106   : > { %5507 = vst [vmem:[#allocation12_spill] sm:$0xff] %v4340_v47  ;;  %5508 = vst [vmem:[#allocation10_spill] sm:$0xff] %v4343_v12  ;;  %v3214_v56 = vunpack.i.h.bf16 %v5514_v22  ;;  %v3213_v36 = vunpack.i.l.bf16 %v5514_v22  ;;  %v4362_v39 = vadd.f32 %v614_v23, %v4168_v49  ;;  %v622_v54 = vmul.f32 %v3087_v24, %v4030_v3  ;;  %v5517_v12 = vld [vmem:[#allocation13_spill] sm:$0xff]  ;;  %v5522_v24 = vld [vmem:[#allocation14_spill] sm:$0xff] }
 0x107   : > { %3455 = vperm.xlu1 %3302, %v3971_v46   ;;  %v4319_v48 = vpop.permute.xlu1 %3156  ;;  %3607 = vperm.xlu0 %3540, %v3832_v1   ;;  %5509 = vst [vmem:[#allocation56_spill] sm:$0xff] %v4346_v42  ;;  %5512 = vst [vmem:[#allocation8_spill] sm:$0xff] %v4353_v45  ;;  %v3312_v47 = vunpack.i.h.bf16 %v5517_v12  ;;  %v4370_v21 = vmul.f32 %v3204_v38, %v4027_v61  ;;  %v4373_v8 = vmul.f32 %v3203_v20, %v4027_v61 }
 0x108   : > { %5513 = vst [vmem:[#allocation57_spill] sm:$0xff] %v4356_v44  ;;  %5516 = vst [vmem:[#allocation11_spill] sm:$0xff] %v4362_v39  ;;  %v4376_v22 = vadd.f32 %v617_v31, %v4195_v4  ;;  %v4379_v49 = vadd.f32 %v618_v9, %v4192_v25  ;;  %v3311_v23 = vunpack.i.l.bf16 %v5517_v12  ;;  %v5523_v39 = vld [vmem:[#allocation17_spill] sm:$0xff]  ;;  %v4389_v38 = vmul.f32 %v3214_v56, %v4027_v61  ;;  %v5524_v9 = vld [vmem:[#allocation15_spill] sm:$0xff] }
 0x109   : > { %v4333_v19 = vpop.permute.xlu0 %3405  ;;  %5518 = vst [vmem:[#allocation3_spill] sm:$0xff] %v4370_v21  ;;  %5519 = vst [vmem:[#allocation13_spill] sm:$0xff] %v4373_v8  ;;  %v3098_v44 = vunpack.i.h.bf16 %v5523_v39  ;;  %v3097_v42 = vunpack.i.l.bf16 %v5523_v39  ;;  %v4392_v4 = vmul.f32 %v3213_v36, %v4027_v61  ;;  %v3092_v25 = vunpack.i.l.bf16 %v5522_v24  ;;  %v5525_v31 = vld [vmem:[#allocation22_spill] sm:$0xff] }
 0x10a   : > { %5520 = vst [vmem:[#allocation58_spill] sm:$0xff] %v4376_v22  ;;  %5521 = vst [vmem:[#allocation59_spill] sm:$0xff] %v4379_v49  ;;  %v3327_v20 = vunpack.i.h.bf16 %v5524_v9  ;;  %v4401_v39 = vadd.f32 %v622_v54, %v4214_v6  ;;  %v5528_v49 = vld [vmem:[#allocation19_spill] sm:$0xff]  ;;  %v3326_v56 = vunpack.i.l.bf16 %v5524_v9  ;;  %v3133_v36 = vunpack.i.h.bf16 %v4216_v33 }
 0x10b   : > { %3464 = vset.pattern.permute.xlu1 %v5510_v15  ;;  %v4349_v50 = vpop.permute.xlu1 %3166  ;;  %3612 = vperm.xlu0 %3540, %v5511_v30   ;;  %v621_v15 = vmul.f32 %v3086_v16, %v4030_v3  ;;  %v3093_v16 = vunpack.i.h.bf16 %v5522_v24  ;;  %v3132_v24 = vunpack.i.l.bf16 %v4216_v33  ;;  %v4410_v51 = vmul.f32 %v3311_v23, %v5528_v49 }
 0x10c   : > { %3466 = vperm.xlu1 %3464, %v5515_v32   ;;  %5527 = vst [vmem:[#allocation17_spill] sm:$0xff] %v4401_v39  ;;  %v4424_v33 = vmul.f32 %v3327_v20, %v5528_v49 }
 0x10d   : > { %v4367_v0 = vpop.permute.xlu0 %3410  ;;  %v4398_v12 = vadd.f32 %v621_v15, %v4219_v29  ;;  %5530 = vst [vmem:[#allocation22_spill] sm:$0xff] %v4410_v51  ;;  %v5531_v29 = vld [vmem:[#allocation20_spill] sm:$0xff]  ;;  %v5535_v51 = vld [vmem:[#allocation21_spill] sm:$0xff] }
 0x10e   : > { %v4413_v15 = vmul.f32 %v3093_v16, %v5531_v29  ;;  %v794_v6 = vmul.f32 %v3098_v44, %v5531_v29  ;;  %v4421_v9 = vmul.f32 %v3092_v25, %v5531_v29  ;;  %5532 = vst [vmem:[#allocation60_spill] sm:$0xff] %v4424_v33  ;;  %v4430_v44 = vmul.f32 %v3326_v56, %v5528_v49 }
 0x10f   : > { %v4385_v45 = vpop.permute.xlu1 %3176  ;;  %3623 = vperm.xlu0 %3540, %v5515_v32   ;;  %5526 = vst [vmem:[#allocation14_spill] sm:$0xff] %v4398_v12  ;;  %v4404_v32 = vmul.f32 %v3312_v47, %v5528_v49  ;;  %v793_v47 = vmul.f32 %v3097_v42, %v5531_v29  ;;  %v5534_v42 = vld [vmem:[#allocation18_spill] sm:$0xff]  ;;  %v3103_v39 = vunpack.i.h.bf16 %v5535_v51  ;;  %v820_v20 = vmul.f32 %v3133_v36, %v5531_v29 }
 0x110   : > { %3471 = vperm.xlu1 %3464, %v5525_v31   ;;  %5533 = vst [vmem:[#allocation61_spill] sm:$0xff] %v4430_v44  ;;  %v3337_v16 = vunpack.i.h.bf16 %v5534_v42  ;;  %v819_v33 = vmul.f32 %v3132_v24, %v5531_v29  ;;  %v5538_v44 = vld [vmem:[#allocation23_spill] sm:$0xff]  ;;  %v3159_v36 = vunpack.i.h.bf16 %v4319_v48 }
 0x111   : > { %5529 = vst [vmem:[#allocation15_spill] sm:$0xff] %v4404_v32  ;;  %v3416_v22 = vpop.permute.xlu0 %3415  ;;  %v3336_v32 = vunpack.i.l.bf16 %v5534_v42  ;;  %v4445_v56 = vadd.f32 %v793_v47, %v4264_v10  ;;  %v3102_v42 = vunpack.i.l.bf16 %v5535_v51  ;;  %v3347_v12 = vunpack.i.h.bf16 %v5538_v44 }
 0x112   : > { %v3418_v21 = vunpack.i.h.bf16 %v3416_v22  ;;  %v3417_v8 = vunpack.i.l.bf16 %v3416_v22  ;;  %v3346_v10 = vunpack.i.l.bf16 %v5538_v44 }
 0x113   : > { %v4417_v54 = vpop.permute.xlu1 %3186  ;;  %3638 = vperm.xlu0 %3540, %v3802_v37   ;;  %5537 = vst [vmem:[#allocation21_spill] sm:$0xff] %v4445_v56  ;;  %v4463_v51 = vmul.f32 %v3336_v32, %v5528_v49  ;;  %v5545_v32 = vld [vmem:[#allocation25_spill] sm:$0xff] }
 0x114   : > { %v624_v22 = vmul.f32 %v3418_v21, %v4030_v3  ;;  %v623_v23 = vmul.f32 %v3417_v8, %v4030_v3  ;;  %3481 = vperm.xlu1 %3464, %v3802_v37   ;;  %v4442_v37 = vadd.f32 %v794_v6, %v4260_v27  ;;  %v4460_v27 = vmul.f32 %v3337_v16, %v5528_v49  ;;  %v5543_v6 = vld [vmem:[#allocation24_spill] sm:$0xff] }
 0x115   : > { %v4435_v25 = vpop.permute.xlu0 %3420  ;;  %5542 = vst [vmem:[#allocation64_spill] sm:$0xff] %v4463_v51  ;;  %v3108_v47 = vunpack.i.h.bf16 %v5543_v6  ;;  %v4475_v16 = vmul.f32 %v3347_v12, %v5528_v49  ;;  %v3356_v44 = vunpack.i.l.bf16 %v5545_v32  ;;  %v4488_v12 = vmul.f32 %v3346_v10, %v5528_v49 }
 0x116   : > { %v656_v21 = vadd.f32 %v624_v22, %v4208_v5  ;;  %v655_v8 = vadd.f32 %v623_v23, %v4211_v13  ;;  %5536 = vst [vmem:[#allocation18_spill] sm:$0xff] %v4442_v37  ;;  %v3158_v5 = vunpack.i.l.bf16 %v4319_v48  ;;  %5541 = vst [vmem:[#allocation63_spill] sm:$0xff] %v4460_v27  ;;  %v4468_v23 = vmul.f32 %v3103_v39, %v5531_v29  ;;  %v5546_v27 = vld [vmem:[#allocation27_spill] sm:$0xff] }
 0x117   : > { %v4449_v46 = vpop.permute.xlu1 %3196  ;;  %3648 = vperm.xlu0 %3540, %v3810_v43   ;;  %v3107_v48 = vunpack.i.l.bf16 %v5543_v6  ;;  %5544 = vst [vmem:[#allocation24_spill] sm:$0xff] %v4475_v16  ;;  %v1098_v39 = vmul.f32 %v3159_v36, %v4027_v61  ;;  %5547 = vst [vmem:[#allocation25_spill] sm:$0xff] %v4488_v12  ;;  %v4491_v16 = vmul.f32 %v3108_v47, %v5531_v29  ;;  %v3168_v51 = vunpack.i.l.bf16 %v4349_v50 }
 0x118   : > { %v4454_v24 = vadd.f32 %v820_v20, %v656_v21  ;;  %v4456_v13 = vadd.f32 %v819_v33, %v655_v8  ;;  %3491 = vperm.xlu1 %3464, %v3810_v43   ;;  %v4472_v43 = vmul.f32 %v3102_v42, %v5531_v29  ;;  %v3357_v21 = vunpack.i.h.bf16 %v5545_v32 }
 0x119   : > { %v3426_v22 = vpop.permute.xlu0 %3425  ;;  %v1097_v6 = vmul.f32 %v3158_v5, %v4027_v61  ;;  %v3169_v32 = vunpack.i.h.bf16 %v4349_v50  ;;  %v4496_v36 = vmul.f32 %v3107_v48, %v5531_v29  ;;  %v5548_v5 = vld [vmem:[#allocation26_spill] sm:$0xff]  ;;  %v3178_v10 = vunpack.i.l.bf16 %v4385_v45 }
 0x11a   : > { %5539 = vst [vmem:[#allocation23_spill] sm:$0xff] %v4454_v24  ;;  %5540 = vst [vmem:[#allocation62_spill] sm:$0xff] %v4456_v13  ;;  %v3428_v33 = vunpack.i.h.bf16 %v3426_v22  ;;  %v3427_v20 = vunpack.i.l.bf16 %v3426_v22  ;;  %v4507_v50 = vmul.f32 %v3357_v21, %v5528_v49  ;;  %v4510_v48 = vmul.f32 %v3356_v44, %v5528_v49 }
 0x11b   : > { %v4479_v8 = vpop.permute.xlu1 %3206  ;;  %3658 = vperm.xlu0 %3540, %v3818_v52   ;;  %v3112_v37 = vunpack.i.l.bf16 %v5548_v5 }
 0x11c   : > { %v1262_v22 = vmul.f32 %v3428_v33, %v5546_v27  ;;  %v1261_v42 = vmul.f32 %v3427_v20, %v5546_v27  ;;  %3501 = vperm.xlu1 %3464, %v3818_v52   ;;  %v3113_v33 = vunpack.i.h.bf16 %v5548_v5  ;;  %v3179_v52 = vunpack.i.h.bf16 %v4385_v45  ;;  %5551 = vst [vmem:[#allocation65_spill] sm:$0xff] %v4507_v50  ;;  %5552 = vst [vmem:[#allocation66_spill] sm:$0xff] %v4510_v48 }
 0x11d   : > { %v3431_v24 = vpop.permute.xlu0 %3430  ;;  %v1102_v45 = vmul.f32 %v3169_v32, %v4027_v61 }
 0x11e   : > { %v4499_v13 = vadd.f32 %v1262_v22, %v1098_v39  ;;  %v4501_v20 = vadd.f32 %v1261_v42, %v1097_v6  ;;  %v3433_v47 = vunpack.i.h.bf16 %v3431_v24  ;;  %v3432_v12 = vunpack.i.l.bf16 %v3431_v24  ;;  %v5553_v39 = vld [vmem:[#allocation30_spill] sm:$0xff] }
 0x11f   : > { %3668 = vperm.xlu0 %3540, %v3826_v59   ;;  %v3367_v22 = vunpack.i.h.bf16 %v5553_v39  ;;  %v1101_v24 = vmul.f32 %v3168_v51, %v4027_v61  ;;  %v4522_v44 = vmul.f32 %v3113_v33, %v5531_v29  ;;  %v3366_v5 = vunpack.i.l.bf16 %v5553_v39 }
 0x120   : > { %5549 = vst [vmem:[#allocation27_spill] sm:$0xff] %v4499_v13  ;;  %5550 = vst [vmem:[#allocation26_spill] sm:$0xff] %v4501_v20  ;;  %3511 = vperm.xlu1 %3464, %v3826_v59   ;;  %v4515_v6 = vpop.permute.xlu1 %3217  ;;  %v1266_v42 = vmul.f32 %v3433_v47, %v5546_v27  ;;  %v1265_v21 = vmul.f32 %v3432_v12, %v5546_v27  ;;  %v1106_v59 = vmul.f32 %v3179_v52, %v4027_v61 }
 0x121   : > { %v3436_v50 = vpop.permute.xlu0 %3435  ;;  %v1105_v13 = vmul.f32 %v3178_v10, %v4027_v61  ;;  %v3189_v51 = vunpack.i.h.bf16 %v4417_v54  ;;  %v3188_v12 = vunpack.i.l.bf16 %v4417_v54  ;;  %v4540_v52 = vmul.f32 %v3112_v37, %v5531_v29 }
 0x122   : > { %v3438_v48 = vunpack.i.h.bf16 %v3436_v50  ;;  %v3437_v56 = vunpack.i.l.bf16 %v3436_v50  ;;  %v4527_v20 = vadd.f32 %v1266_v42, %v1102_v45  ;;  %v4529_v32 = vadd.f32 %v1265_v21, %v1101_v24 }
 0x123   : > { %3678 = vperm.xlu0 %3540, %v3832_v1   ;;  %v4543_v10 = vmul.f32 %v3367_v22, %v5528_v49  ;;  %v3118_v39 = vunpack.i.h.bf16 %v4104_v55  ;;  %v3117_v45 = vunpack.i.l.bf16 %v4104_v55  ;;  %v3377_v37 = vunpack.i.h.bf16 %v4126_v17 }
 0x124   : > { %5554 = vst [vmem:[#allocation30_spill] sm:$0xff] %v4527_v20  ;;  %v1270_v33 = vmul.f32 %v3438_v48, %v5546_v27  ;;  %v1269_v47 = vmul.f32 %v3437_v56, %v5546_v27  ;;  %3521 = vperm.xlu1 %3464, %v3832_v1   ;;  %v4537_v50 = vpop.permute.xlu1 %3222  ;;  %v4552_v1 = vmul.f32 %v3366_v5, %v5528_v49  ;;  %v3199_v21 = vunpack.i.h.bf16 %v4449_v46 }
 0x125   : > { %5555 = vst [vmem:[#allocation67_spill] sm:$0xff] %v4543_v10  ;;  %v3441_v24 = vpop.permute.xlu0 %3440  ;;  %v3198_v22 = vunpack.i.l.bf16 %v4449_v46  ;;  %v1110_v55 = vmul.f32 %v3189_v51, %v4027_v61  ;;  %v3376_v46 = vunpack.i.l.bf16 %v4126_v17  ;;  %v3382_v51 = vunpack.i.l.bf16 %v4173_v40 }
 0x126   : > { %v4547_v54 = vadd.f32 %v1270_v33, %v1106_v59  ;;  %v4549_v48 = vadd.f32 %v1269_v47, %v1105_v13  ;;  %v3443_v56 = vunpack.i.h.bf16 %v3441_v24  ;;  %v3442_v42 = vunpack.i.l.bf16 %v3441_v24  ;;  %5558 = vst [vmem:[#allocation70_spill] sm:$0xff] %v4552_v1 }
 0x127   : > { %3688 = vperm.xlu0 %3540, %v5511_v30   ;;  %v1109_v59 = vmul.f32 %v3188_v12, %v4027_v61  ;;  %v4566_v47 = vmul.f32 %v3118_v39, %v5531_v29  ;;  %v4569_v24 = vmul.f32 %v3117_v45, %v5531_v29  ;;  %v3383_v39 = vunpack.i.h.bf16 %v4173_v40 }
 0x128   : > { %5556 = vst [vmem:[#allocation68_spill] sm:$0xff] %v4547_v54  ;;  %5557 = vst [vmem:[#allocation69_spill] sm:$0xff] %v4549_v48  ;;  %v1274_v13 = vmul.f32 %v3443_v56, %v5546_v27  ;;  %v1273_v33 = vmul.f32 %v3442_v42, %v5546_v27  ;;  %3531 = vperm.xlu1 %3464, %v5511_v30   ;;  %v4563_v5 = vpop.permute.xlu1 %3227  ;;  %v4578_v30 = vmul.f32 %v3377_v37, %v5528_v49 }
 0x129   : > { %v3446_v10 = vpop.permute.xlu0 %3445  ;;  %v1114_v54 = vmul.f32 %v3199_v21, %v4027_v61  ;;  %v1113_v45 = vmul.f32 %v3198_v22, %v4027_v61  ;;  %v3209_v17 = vunpack.i.h.bf16 %v4479_v8  ;;  %v3208_v48 = vunpack.i.l.bf16 %v4479_v8 }
 0x12a   : > { %v4573_v12 = vadd.f32 %v1274_v13, %v1110_v55  ;;  %v4575_v56 = vadd.f32 %v1273_v33, %v1109_v59  ;;  %v3448_v42 = vunpack.i.h.bf16 %v3446_v10  ;;  %v3447_v1 = vunpack.i.l.bf16 %v3446_v10  ;;  %5561 = vst [vmem:[#allocation73_spill] sm:$0xff] %v4578_v30  ;;  %v5564_v33 = vld [vmem:[#allocation2_spill] sm:$0xff] }
 0x12b   : > { %v5562_v13 = vmov 2   ;;  %v4591_v37 = vmul.f32 %v3376_v46, %v5528_v49  ;;  %v593_v40 = vmul.f32 %v3382_v51, %v4030_v3  ;;  %v3388_v21 = vunpack.i.h.bf16 %v4201_v41 }
 0x12c   : > { %5559 = vst [vmem:[#allocation71_spill] sm:$0xff] %v4573_v12  ;;  %5560 = vst [vmem:[#allocation72_spill] sm:$0xff] %v4575_v56  ;;  %v1278_v55 = vmul.f32 %v3448_v42, %v5546_v27  ;;  %v1277_v59 = vmul.f32 %v3447_v1, %v5546_v27  ;;  %3616 = vset.pattern.permute.xlu1 %v5562_v13  ;;  %v4588_v10 = vpop.permute.xlu1 %3232  ;;  %v3387_v22 = vunpack.i.l.bf16 %v4201_v41  ;;  %v3123_v12 = vunpack.i.h.bf16 %v4144_v11 }
 0x12d   : > { %5563 = vst [vmem:[#allocation74_spill] sm:$0xff] %v4591_v37  ;;  %3618 = vperm.xlu1 %3616, %v5564_v33   ;;  %v3451_v8 = vpop.permute.xlu0 %3450  ;;  %v3122_v46 = vunpack.i.l.bf16 %v4144_v11  ;;  %v594_v37 = vmul.f32 %v3383_v39, %v4030_v3  ;;  %v3128_v51 = vunpack.i.h.bf16 %v4178_v14  ;;  %v1118_v49 = vmul.f32 %v3209_v17, %v4027_v61 }
 0x12e   : > { %v4597_v30 = vadd.f32 %v1278_v55, %v1114_v54  ;;  %v4599_v42 = vadd.f32 %v1277_v59, %v1113_v45  ;;  %v3453_v1 = vunpack.i.h.bf16 %v3451_v8  ;;  %v3452_v13 = vunpack.i.l.bf16 %v3451_v8  ;;  %v5567_v55 = vld [vmem:[#allocation29_spill] sm:$0xff] }
 0x12f   : > { %v1117_v41 = vmul.f32 %v3208_v48, %v4027_v61  ;;  %v625_v59 = vadd.f32 %v593_v40, %v5567_v55  ;;  %v3127_v8 = vunpack.i.l.bf16 %v4178_v14  ;;  %v3393_v11 = vunpack.i.h.bf16 %v4237_v53 }
 0x130   : > { %5565 = vst [vmem:[#allocation2_spill] sm:$0xff] %v4597_v30  ;;  %5566 = vst [vmem:[#allocation75_spill] sm:$0xff] %v4599_v42  ;;  %v1282_v33 = vmul.f32 %v3453_v1, %v5546_v27  ;;  %v1281_v54 = vmul.f32 %v3452_v13, %v5546_v27  ;;  %v4609_v45 = vpop.permute.xlu1 %3237  ;;  %v3392_v39 = vunpack.i.l.bf16 %v4237_v53  ;;  %v600_v48 = vmul.f32 %v3388_v21, %v4030_v3  ;;  %v5570_v42 = vld [vmem:[#allocation28_spill] sm:$0xff] }
 0x131   : > { %3628 = vperm.xlu1 %3616, %v5525_v31   ;;  %v4616_v30 = vpop.permute.xlu0 %3460  ;;  %v599_v17 = vmul.f32 %v3387_v22, %v4030_v3  ;;  %v626_v40 = vadd.f32 %v594_v37, %v5570_v42  ;;  %v3398_v14 = vunpack.i.h.bf16 %v4269_v26  ;;  %v3397_v55 = vunpack.i.l.bf16 %v4269_v26 }
 0x132   : > { %v4620_v1 = vadd.f32 %v1282_v33, %v1118_v49  ;;  %v4622_v13 = vadd.f32 %v1281_v54, %v1117_v41  ;;  %v3403_v53 = vunpack.i.h.bf16 %v4305_v28  ;;  %v812_v31 = vmul.f32 %v3123_v12, %v5531_v29  ;;  %v5571_v33 = vld [vmem:[#allocation4_spill] sm:$0xff]  ;;  %v5573_v54 = vld [vmem:[#allocation31_spill] sm:$0xff] }
 0x133   : > { %v811_v56 = vmul.f32 %v3122_v46, %v5531_v29  ;;  %v3402_v21 = vunpack.i.l.bf16 %v4305_v28  ;;  %v3408_v22 = vunpack.i.h.bf16 %v4333_v19  ;;  %v4635_v41 = vmul.f32 %v3128_v51, %v5531_v29  ;;  %v5574_v51 = vld [vmem:[#allocation32_spill] sm:$0xff] }
 0x134   : > { %5568 = vst [vmem:[#allocation29_spill] sm:$0xff] %v4620_v1  ;;  %5569 = vst [vmem:[#allocation76_spill] sm:$0xff] %v4622_v13  ;;  %v4632_v49 = vpop.permute.xlu1 %3242  ;;  %v604_v37 = vmul.f32 %v3393_v11, %v4030_v3  ;;  %v603_v42 = vmul.f32 %v3392_v39, %v4030_v3  ;;  %v3407_v26 = vunpack.i.l.bf16 %v4333_v19  ;;  %v4644_v46 = vadd.f32 %v4421_v9, %v625_v59 }
 0x135   : > { %3633 = vperm.xlu1 %3616, %v5571_v33   ;;  %v4641_v12 = vpop.permute.xlu0 %3476  ;;  %v4647_v28 = vmul.f32 %v3127_v8, %v5531_v29  ;;  %v632_v1 = vadd.f32 %v600_v48, %v5573_v54  ;;  %v631_v13 = vadd.f32 %v599_v17, %v5574_v51  ;;  %v4652_v11 = vadd.f32 %v4413_v15, %v626_v40  ;;  %v5576_v17 = vld [vmem:[#allocation33_spill] sm:$0xff]  ;;  %v5577_v15 = vld [vmem:[#allocation34_spill] sm:$0xff] }
 0x136   : > { %5572 = vst [vmem:[#allocation28_spill] sm:$0xff] %v4644_v46  ;;  %v608_v39 = vmul.f32 %v3398_v14, %v4030_v3  ;;  %v607_v19 = vmul.f32 %v3397_v55, %v4030_v3  ;;  %v612_v33 = vmul.f32 %v3403_v53, %v4030_v3  ;;  %v3144_v20 = vunpack.i.h.bf16 %v4253_v35  ;;  %v5578_v51 = vld [vmem:[#allocation5_spill] sm:$0xff] }
 0x137   : > { %5575 = vst [vmem:[#allocation4_spill] sm:$0xff] %v4652_v11  ;;  %v3143_v9 = vunpack.i.l.bf16 %v4253_v35  ;;  %v611_v59 = vmul.f32 %v3402_v21, %v4030_v3  ;;  %v616_v8 = vmul.f32 %v3408_v22, %v4030_v3  ;;  %v636_v54 = vadd.f32 %v604_v37, %v5576_v17  ;;  %v5581_v17 = vld [vmem:[#allocation35_spill] sm:$0xff]  ;;  %v5583_v46 = vld [vmem:[#allocation37_spill] sm:$0xff] }
 0x138   : > { %v4661_v48 = vpop.permute.xlu1 %3247  ;;  %v635_v40 = vadd.f32 %v603_v42, %v5577_v15  ;;  %v3149_v14 = vunpack.i.h.bf16 %v4282_v62  ;;  %v615_v55 = vmul.f32 %v3407_v26, %v4030_v3  ;;  %v4671_v35 = vadd.f32 %v4468_v23, %v632_v1  ;;  %v5582_v15 = vld [vmem:[#allocation36_spill] sm:$0xff]  ;;  %v5584_v1 = vld [vmem:[#allocation38_spill] sm:$0xff] }
 0x139   : > { %3643 = vperm.xlu1 %3616, %v5578_v51   ;;  %v4668_v53 = vpop.permute.xlu0 %3486  ;;  %v4674_v21 = vadd.f32 %v4472_v43, %v631_v13  ;;  %v3413_v22 = vunpack.i.h.bf16 %v4367_v0  ;;  %v3412_v37 = vunpack.i.l.bf16 %v4367_v0  ;;  %v640_v42 = vadd.f32 %v608_v39, %v5581_v17  ;;  %v5585_v43 = vld [vmem:[#allocation39_spill] sm:$0xff] }
 0x13a   : > { %5579 = vst [vmem:[#allocation31_spill] sm:$0xff] %v4671_v35  ;;  %v639_v11 = vadd.f32 %v607_v19, %v5582_v15  ;;  %v3148_v26 = vunpack.i.l.bf16 %v4282_v62  ;;  %v644_v51 = vadd.f32 %v612_v33, %v5583_v46  ;;  %v1092_v29 = vmul.f32 %v3144_v20, %v4027_v61  ;;  %v5586_v46 = vld [vmem:[#allocation40_spill] sm:$0xff]  ;;  %v5587_v20 = vld [vmem:[#allocation6_spill] sm:$0xff] }
 0x13b   : > { %5580 = vst [vmem:[#allocation32_spill] sm:$0xff] %v4674_v21  ;;  %v1091_v23 = vmul.f32 %v3143_v9, %v4027_v61  ;;  %v643_v35 = vadd.f32 %v611_v59, %v5584_v1  ;;  %v648_v13 = vadd.f32 %v616_v8, %v5585_v43  ;;  %v4689_v0 = vadd.f32 %v4491_v16, %v636_v54 }
 0x13c   : > { %v4686_v21 = vpop.permute.xlu1 %3252  ;;  %v4692_v39 = vadd.f32 %v4496_v36, %v635_v40  ;;  %v4695_v62 = vmul.f32 %v3149_v14, %v4027_v61  ;;  %v647_v19 = vadd.f32 %v615_v55, %v5586_v46  ;;  %v620_v9 = vmul.f32 %v3413_v22, %v4030_v3 }
 0x13d   : > { %3653 = vperm.xlu1 %3616, %v5587_v20   ;;  %v4699_v33 = vpop.permute.xlu0 %3496  ;;  %v619_v59 = vmul.f32 %v3412_v37, %v4030_v3  ;;  %v3423_v8 = vunpack.i.h.bf16 %v4435_v25  ;;  %v3422_v16 = vunpack.i.l.bf16 %v4435_v25  ;;  %v4706_v36 = vadd.f32 %v4522_v44, %v640_v42 }
 0x13e   : > { %v4709_v54 = vadd.f32 %v4540_v52, %v639_v11  ;;  %v1093_v40 = vmul.f32 %v3148_v26, %v4027_v61  ;;  %v4713_v14 = vadd.f32 %v4566_v47, %v644_v51  ;;  %v4716_v55 = vadd.f32 %v4569_v24, %v643_v35  ;;  %v5594_v11 = vld [vmem:[#allocation7_spill] sm:$0xff]  ;;  %v5595_v47 = vld [vmem:[#allocation16_spill] sm:$0xff]  ;;  %v5597_v24 = vld [vmem:[#allocation41_spill] sm:$0xff] }
 0x13f   : > { %5588 = vst [vmem:[#allocation33_spill] sm:$0xff] %v4706_v36  ;;  %v4718_v22 = vadd.f32 %v812_v31, %v648_v13  ;;  %v3220_v3 = vunpack.i.h.bf16 %v4515_v6  ;;  %v3219_v25 = vunpack.i.l.bf16 %v4515_v6  ;;  %v4722_v44 = vadd.f32 %v811_v56, %v647_v19  ;;  %v5598_v35 = vld [vmem:[#allocation42_spill] sm:$0xff]  ;;  %v5644_v36 = vld [vmem:[#allocation11_spill] sm:$0xff] }
 0x140   : > { %5589 = vst [vmem:[#allocation34_spill] sm:$0xff] %v4709_v54  ;;  %5590 = vst [vmem:[#allocation5_spill] sm:$0xff] %v4713_v14  ;;  %v3258_v37 = vpop.permute.xlu1 %3257  ;;  %v4729_v42 = vrot.slane %v5595_v47, %v4016_v2  ;;  %v652_v31 = vadd.f32 %v620_v9, %v5597_v24  ;;  %v651_v15 = vadd.f32 %v619_v59, %v5598_v35  ;;  %v3225_v56 = vunpack.i.h.bf16 %v4537_v50  ;;  %v5640_v14 = vld [vmem:[#allocation45_spill] sm:$0xff] }
 0x141   : > { %5591 = vst [vmem:[#allocation35_spill] sm:$0xff] %v4716_v55  ;;  %5592 = vst [vmem:[#allocation36_spill] sm:$0xff] %v4718_v22  ;;  %v3260_v17 = vunpack.i.h.bf16 %v3258_v37  ;;  %v3259_v52 = vunpack.i.l.bf16 %v3258_v37  ;;  %3663 = vperm.xlu1 %3616, %v5594_v11   ;;  %v4725_v61 = vpop.permute.xlu0 %3506  ;;  %v1256_v26 = vmul.f32 %v3423_v8, %v5546_v27  ;;  %v1255_v6 = vmul.f32 %v3422_v16, %v5546_v27  ;;  %v5641_v55 = vld [vmem:[#allocation76_spill] sm:$0xff] }
 0x142   : > { %5593 = vst [vmem:[#allocation37_spill] sm:$0xff] %v4722_v44  ;;  %5596 = vst [vmem:[#allocation38_spill] sm:$0xff] %v4729_v42  ;;  %v3224_v51 = vunpack.i.l.bf16 %v4537_v50  ;;  %v1254_v13 = vmul.f32 %v3220_v3, %v5546_v27  ;;  %v1253_v2 = vmul.f32 %v3219_v25, %v5546_v27  ;;  %v3230_v46 = vunpack.i.h.bf16 %v4563_v5  ;;  %v5620_v42 = vld [vmem:[#allocation69_spill] sm:$0xff] }
 0x143   : > { %v1284_v1 = vmul.f32 %v3260_v17, %v5546_v27  ;;  %v1283_v43 = vmul.f32 %v3259_v52, %v5546_v27  ;;  %v3229_v19 = vunpack.i.l.bf16 %v4563_v5  ;;  %v3235_v20 = vunpack.i.h.bf16 %v4588_v10 }
 0x144   : > { %v3234_v9 = vunpack.i.l.bf16 %v4588_v10  ;;  %v4755_v3 = vadd.f32 %v4635_v41, %v652_v31  ;;  %v4758_v5 = vadd.f32 %v4647_v28, %v651_v15  ;;  %v1288_v10 = vadd.f32 %v1256_v26, %v1092_v29 }
 0x145   : > { %v4746_v59 = vadd.f32 %v1283_v43, %v4392_v4  ;;  %v4749_v50 = vadd.f32 %v1284_v1, %v4389_v38  ;;  %3673 = vperm.xlu1 %3616, %v3822_v57   ;;  %v3264_v8 = vpop.permute.xlu1 %3263  ;;  %v4752_v16 = vpop.permute.xlu0 %3516  ;;  %v1287_v17 = vadd.f32 %v1255_v6, %v1091_v23  ;;  %v1258_v4 = vmul.f32 %v3225_v56, %v5546_v27 }
 0x146   : > { %5601 = vst [vmem:[#allocation6_spill] sm:$0xff] %v4755_v3  ;;  %5602 = vst [vmem:[#allocation7_spill] sm:$0xff] %v4758_v5  ;;  %v3266_v25 = vunpack.i.h.bf16 %v3264_v8  ;;  %v3265_v37 = vunpack.i.l.bf16 %v3264_v8  ;;  %v1257_v38 = vmul.f32 %v3224_v51, %v5546_v27  ;;  %v4763_v52 = vadd.f32 %v1253_v2, %v4233_v60 }
 0x147   : > { %5599 = vst [vmem:[#allocation39_spill] sm:$0xff] %v4746_v59  ;;  %5600 = vst [vmem:[#allocation40_spill] sm:$0xff] %v4749_v50  ;;  %v4766_v57 = vadd.f32 %v1254_v13, %v4230_v58  ;;  %v1260_v28 = vmul.f32 %v3230_v46, %v5546_v27  ;;  %v1259_v47 = vmul.f32 %v3229_v19, %v5546_v27  ;;  %v3240_v56 = vunpack.i.h.bf16 %v4609_v45  ;;  %v5604_v19 = vld [vmem:[#allocation46_spill] sm:$0xff] }
 0x148   : > { %v1452_v41 = vmul.f32 %v3266_v25, %v4287_v7  ;;  %v1451_v11 = vmul.f32 %v3265_v37, %v4287_v7  ;;  %v1264_v29 = vmul.f32 %v3235_v20, %v5546_v27  ;;  %v1263_v23 = vmul.f32 %v3234_v9, %v5546_v27 }
 0x149   : > { %3683 = vperm.xlu1 %3616, %v3830_v63   ;;  %v3269_v24 = vpop.permute.xlu1 %3268  ;;  %v4775_v60 = vpop.permute.xlu0 %3526  ;;  %v1289_v26 = vadd.f32 %v1257_v38, %v1093_v40  ;;  %v1290_v6 = vadd.f32 %v1258_v4, %v4695_v62  ;;  %v3239_v51 = vunpack.i.l.bf16 %v4609_v45  ;;  %v3463_v1 = vunpack.i.h.bf16 %v4616_v30  ;;  %v5603_v40 = vld [vmem:[#allocation47_spill] sm:$0xff]  ;;  %v5605_v45 = vld [vmem:[#allocation9_spill] sm:$0xff] }
 0x14a   : > { %v4777_v31 = vadd.f32 %v1451_v11, %v1287_v17  ;;  %v4779_v58 = vadd.f32 %v1452_v41, %v1288_v10  ;;  %v3271_v35 = vunpack.i.h.bf16 %v3269_v24  ;;  %v3270_v15 = vunpack.i.l.bf16 %v3269_v24  ;;  %v5606_v38 = vld [vmem:[#allocation43_spill] sm:$0xff] }
 0x14b   : > { %v3462_v63 = vunpack.i.l.bf16 %v4616_v30  ;;  %v4789_v2 = vadd.f32 %v1259_v47, %v4257_v34  ;;  %v4792_v46 = vadd.f32 %v1260_v28, %v4249_v18  ;;  %v4795_v62 = vadd.f32 %v1263_v23, %v5603_v40 }
 0x14c   : > { %v1454_v43 = vmul.f32 %v3271_v35, %v4287_v7  ;;  %v1453_v13 = vmul.f32 %v3270_v15, %v4287_v7  ;;  %v4798_v20 = vadd.f32 %v1264_v29, %v5604_v19  ;;  %v1268_v10 = vmul.f32 %v3240_v56, %v5546_v27  ;;  %v5610_v56 = vld [vmem:[#allocation27_spill] sm:$0xff] }
 0x14d   : > { %3693 = vperm.xlu1 %3616, %v5605_v45   ;;  %v3274_v9 = vpop.permute.xlu1 %3273  ;;  %v3537_v30 = vpop.permute.xlu0 %3536  ;;  %v1267_v18 = vmul.f32 %v3239_v51, %v5546_v27  ;;  %v4808_v41 = vmul.f32 %v3463_v1, %v5606_v38  ;;  %v4811_v11 = vmul.f32 %v3462_v63, %v5606_v38  ;;  %v3245_v29 = vunpack.i.h.bf16 %v4632_v49  ;;  %v5611_v45 = vld [vmem:[#allocation51_spill] sm:$0xff] }
 0x14e   : > { %v4801_v8 = vadd.f32 %v1453_v13, %v1289_v26  ;;  %v4803_v25 = vadd.f32 %v1454_v43, %v1290_v6  ;;  %v3276_v37 = vunpack.i.h.bf16 %v3274_v9  ;;  %v3275_v34 = vunpack.i.l.bf16 %v3274_v9  ;;  %v5609_v26 = vld [vmem:[#allocation26_spill] sm:$0xff] }
 0x14f   : > { %v3539_v17 = vunpack.i.h.bf16 %v3537_v30  ;;  %v3538_v4 = vunpack.i.l.bf16 %v3537_v30  ;;  %v3244_v23 = vunpack.i.l.bf16 %v4632_v49  ;;  %v3479_v13 = vunpack.i.h.bf16 %v4641_v12  ;;  %v5612_v30 = vld [vmem:[#allocation50_spill] sm:$0xff] }
 0x150   : > { %v1458_v28 = vmul.f32 %v3276_v37, %v4287_v7  ;;  %v1457_v47 = vmul.f32 %v3275_v34, %v4287_v7  ;;  %v3478_v49 = vunpack.i.l.bf16 %v4641_v12  ;;  %v3250_v40 = vunpack.i.h.bf16 %v4661_v48 }
 0x151   : > { %v4818_v24 = vmul.f32 %v3539_v17, %v5606_v38  ;;  %v4821_v35 = vmul.f32 %v3538_v4, %v5606_v38  ;;  %v3279_v15 = vpop.permute.xlu1 %3278  ;;  %v3249_v19 = vunpack.i.l.bf16 %v4661_v48  ;;  %v4836_v9 = vadd.f32 %v1267_v18, %v5611_v45  ;;  %v5614_v18 = vld [vmem:[#allocation30_spill] sm:$0xff] }
 0x152   : > { %v4824_v6 = vadd.f32 %v1457_v47, %v5609_v26  ;;  %v4827_v51 = vadd.f32 %v1458_v28, %v5610_v56  ;;  %v3281_v1 = vunpack.i.h.bf16 %v3279_v15  ;;  %v3280_v63 = vunpack.i.l.bf16 %v3279_v15  ;;  %v4829_v43 = vpop.permute.xlu0 %3542 }
 0x153   : > { %5607 = vst [vmem:[#allocation16_spill] sm:$0xff] %v4818_v24  ;;  %5608 = vst [vmem:[#allocation41_spill] sm:$0xff] %v4821_v35  ;;  %v4839_v37 = vadd.f32 %v1268_v10, %v5612_v30  ;;  %v1272_v4 = vmul.f32 %v3245_v29, %v5546_v27  ;;  %v1271_v28 = vmul.f32 %v3244_v23, %v5546_v27  ;;  %v3489_v12 = vunpack.i.h.bf16 %v4668_v53 }
 0x154   : > { %v1462_v34 = vmul.f32 %v3281_v1, %v4287_v7  ;;  %v1461_v17 = vmul.f32 %v3280_v63, %v4287_v7  ;;  %v3488_v47 = vunpack.i.l.bf16 %v4668_v53  ;;  %v4856_v63 = vmul.f32 %v3479_v13, %v5606_v38  ;;  %v5618_v13 = vld [vmem:[#allocation54_spill] sm:$0xff] }
 0x155   : > { %v3284_v15 = vpop.permute.xlu1 %3283  ;;  %v4859_v29 = vmul.f32 %v3478_v49, %v5606_v38  ;;  %v1276_v23 = vmul.f32 %v3250_v40, %v5546_v27  ;;  %v1275_v53 = vmul.f32 %v3249_v19, %v5546_v27  ;;  %v3254_v45 = vunpack.i.l.bf16 %v4686_v21 }
 0x156   : > { %v4848_v48 = vadd.f32 %v1461_v17, %v4529_v32  ;;  %v4851_v26 = vadd.f32 %v1462_v34, %v5614_v18  ;;  %v3286_v10 = vunpack.i.h.bf16 %v3284_v15  ;;  %v3285_v56 = vunpack.i.l.bf16 %v3284_v15  ;;  %v4853_v1 = vpop.permute.xlu0 %3547  ;;  %v5616_v17 = vld [vmem:[#allocation55_spill] sm:$0xff] }
 0x157   : > { %v3255_v32 = vunpack.i.h.bf16 %v4686_v21  ;;  %v4868_v15 = vadd.f32 %v1271_v28, %v5616_v17  ;;  %v4871_v18 = vadd.f32 %v1272_v4, %v5618_v13  ;;  %v4874_v49 = vmul.f32 %v3489_v12, %v5606_v38  ;;  %v5622_v21 = vld [vmem:[#allocation68_spill] sm:$0xff] }
 0x158   : > { %5613 = vst [vmem:[#allocation42_spill] sm:$0xff] %v4848_v48  ;;  %5615 = vst [vmem:[#allocation47_spill] sm:$0xff] %v4851_v26  ;;  %v1466_v30 = vmul.f32 %v3286_v10, %v4287_v7  ;;  %v1465_v34 = vmul.f32 %v3285_v56, %v4287_v7  ;;  %v4877_v40 = vmul.f32 %v3488_v47, %v5606_v38  ;;  %v5624_v17 = vld [vmem:[#allocation8_spill] sm:$0xff]  ;;  %v3499_v47 = vunpack.i.h.bf16 %v4699_v33 }
 0x159   : > { %5617 = vst [vmem:[#allocation46_spill] sm:$0xff] %v4868_v15  ;;  %5619 = vst [vmem:[#allocation9_spill] sm:$0xff] %v4871_v18  ;;  %v3289_v19 = vpop.permute.xlu1 %3288  ;;  %v4888_v4 = vadd.f32 %v1275_v53, %v5624_v17  ;;  %v5626_v13 = vld [vmem:[#allocation56_spill] sm:$0xff]  ;;  %v3498_v3 = vunpack.i.l.bf16 %v4699_v33  ;;  %v3508_v53 = vunpack.i.l.bf16 %v4725_v61  ;;  %v3545_v17 = vunpack.i.h.bf16 %v4829_v43  ;;  %v5629_v33 = vld [vmem:[#allocation71_spill] sm:$0xff] }
 0x15a   : > { %v4880_v50 = vadd.f32 %v1465_v34, %v5620_v42  ;;  %v4883_v10 = vadd.f32 %v1466_v30, %v5622_v21  ;;  %v3291_v56 = vunpack.i.h.bf16 %v3289_v19  ;;  %v3290_v59 = vunpack.i.l.bf16 %v3289_v19  ;;  %v4885_v28 = vpop.permute.xlu0 %3552  ;;  %v5642_v15 = vld [vmem:[#allocation29_spill] sm:$0xff] }
 0x15b   : > { %5625 = vst [vmem:[#allocation27_spill] sm:$0xff] %v4888_v4  ;;  %v4891_v12 = vadd.f32 %v1276_v23, %v5626_v13  ;;  %v1280_v42 = vmul.f32 %v3255_v32, %v5546_v27  ;;  %v1279_v34 = vmul.f32 %v3254_v45, %v5546_v27  ;;  %v3509_v21 = vunpack.i.h.bf16 %v4725_v61 }
 0x15c   : > { %5621 = vst [vmem:[#allocation43_spill] sm:$0xff] %v4880_v50  ;;  %5623 = vst [vmem:[#allocation26_spill] sm:$0xff] %v4883_v10  ;;  %v1470_v30 = vmul.f32 %v3291_v56, %v4287_v7  ;;  %v1469_v19 = vmul.f32 %v3290_v59, %v4287_v7  ;;  %v3544_v23 = vunpack.i.l.bf16 %v4829_v43  ;;  %v5628_v10 = vld [vmem:[#allocation72_spill] sm:$0xff]  ;;  %v4908_v45 = vmul.f32 %v3499_v47, %v5606_v38  ;;  %v5630_v43 = vld [vmem:[#allocation13_spill] sm:$0xff] }
 0x15d   : > { %5627 = vst [vmem:[#allocation51_spill] sm:$0xff] %v4891_v12  ;;  %v3294_v13 = vpop.permute.xlu1 %3293  ;;  %v4911_v59 = vmul.f32 %v3498_v3, %v5606_v38  ;;  %v3519_v61 = vunpack.i.h.bf16 %v4752_v16  ;;  %v3518_v56 = vunpack.i.l.bf16 %v4752_v16  ;;  %v4916_v35 = vadd.f32 %v1279_v34, %v5630_v43  ;;  %v5635_v34 = vld [vmem:[#allocation75_spill] sm:$0xff] }
 0x15e   : > { %v1501_v50 = vadd.f32 %v1469_v19, %v5628_v10  ;;  %v1502_v5 = vadd.f32 %v1470_v30, %v5629_v33  ;;  %v3296_v32 = vunpack.i.h.bf16 %v3294_v13  ;;  %v3295_v24 = vunpack.i.l.bf16 %v3294_v13  ;;  %v4905_v27 = vpop.permute.xlu0 %3557  ;;  %v5632_v10 = vld [vmem:[#allocation3_spill] sm:$0xff]  ;;  %v5634_v33 = vld [vmem:[#allocation20_spill] sm:$0xff] }
 0x15f   : > { %5631 = vst [vmem:[#allocation50_spill] sm:$0xff] %v4916_v35  ;;  %v4919_v19 = vadd.f32 %v1280_v42, %v5632_v10  ;;  %v4924_v47 = vmul.f32 %v3509_v21, %v5606_v38  ;;  %v4927_v3 = vmul.f32 %v3508_v53, %v5606_v38  ;;  %v792_v22 = vmul.f32 %v3545_v17, %v5634_v33  ;;  %v5636_v35 = vld [vmem:[#allocation2_spill] sm:$0xff] }
 0x160   : > { %v1474_v30 = vmul.f32 %v3296_v32, %v4287_v7  ;;  %v1473_v13 = vmul.f32 %v3295_v24, %v4287_v7  ;;  %v791_v16 = vmul.f32 %v3544_v23, %v5634_v33  ;;  %v4934_v24 = vmul.f32 %v3519_v61, %v5606_v38 }
 0x161   : > { %5633 = vst [vmem:[#allocation30_spill] sm:$0xff] %v4919_v19  ;;  %v3299_v44 = vpop.permute.xlu1 %3298  ;;  %v4937_v21 = vmul.f32 %v3518_v56, %v5606_v38  ;;  %v3550_v17 = vunpack.i.h.bf16 %v4853_v1  ;;  %v3549_v23 = vunpack.i.l.bf16 %v4853_v1  ;;  %v5639_v56 = vld [vmem:[#allocation44_spill] sm:$0xff] }
 0x162   : > { %v1505_v43 = vadd.f32 %v1473_v13, %v5635_v34  ;;  %v1506_v42 = vadd.f32 %v1474_v30, %v5636_v35  ;;  %v3301_v10 = vunpack.i.h.bf16 %v3299_v44  ;;  %v3300_v19 = vunpack.i.l.bf16 %v3299_v44  ;;  %v3563_v32 = vpop.permute.xlu0 %3562  ;;  %5637 = vst [vmem:[#allocation55_spill] sm:$0xff] %v4934_v24 }
 0x163   : > { %5638 = vst [vmem:[#allocation54_spill] sm:$0xff] %v4937_v21  ;;  %v3565_v53 = vunpack.i.h.bf16 %v3563_v32  ;;  %v3564_v12 = vunpack.i.l.bf16 %v3563_v32  ;;  %v3529_v35 = vunpack.i.h.bf16 %v4775_v60  ;;  %v3528_v44 = vunpack.i.l.bf16 %v4775_v60  ;;  %v5643_v21 = vld [vmem:[#allocation57_spill] sm:$0xff] }
 0x164   : > { %v1478_v4 = vmul.f32 %v3301_v10, %v4287_v7  ;;  %v1477_v13 = vmul.f32 %v3300_v19, %v4287_v7  ;;  %v823_v34 = vadd.f32 %v791_v16, %v5639_v56  ;;  %v824_v32 = vadd.f32 %v792_v22, %v5640_v14 }
 0x165   : > { %v810_v61 = vmul.f32 %v3565_v53, %v5634_v33  ;;  %v809_v30 = vmul.f32 %v3564_v12, %v5634_v33  ;;  %v798_v53 = vmul.f32 %v3550_v17, %v5634_v33  ;;  %v797_v12 = vmul.f32 %v3549_v23, %v5634_v33  ;;  %v5646_v23 = vld [vmem:[#allocation21_spill] sm:$0xff] }
 0x166   : > { %v1509_v18 = vadd.f32 %v1477_v13, %v5641_v55  ;;  %v1510_v1 = vadd.f32 %v1478_v4, %v5642_v15  ;;  %v3305_v24 = vpop.permute.xlu1 %3304  ;;  %v3568_v10 = vpop.permute.xlu0 %3567  ;;  %v5645_v55 = vld [vmem:[#allocation19_spill] sm:$0xff]  ;;  %v4962_v4 = vmul.f32 %v3529_v35, %v5606_v38 }
 0x167   : > { %v841_v19 = vadd.f32 %v809_v30, %v5643_v21  ;;  %v842_v54 = vadd.f32 %v810_v61, %v5644_v36  ;;  %v3307_v26 = vunpack.i.h.bf16 %v3305_v24  ;;  %v3306_v60 = vunpack.i.l.bf16 %v3305_v24  ;;  %v5649_v61 = vld [vmem:[#allocation59_spill] sm:$0xff] }
 0x168   : > { %v3570_v48 = vunpack.i.h.bf16 %v3568_v10  ;;  %v3569_v16 = vunpack.i.l.bf16 %v3568_v10  ;;  %v4965_v36 = vmul.f32 %v3528_v44, %v5606_v38 }
 0x169   : > { %v4955_v56 = vadd.f32 %v1501_v50, %v841_v19  ;;  %v4957_v14 = vadd.f32 %v1502_v5, %v842_v54  ;;  %v1782_v22 = vmul.f32 %v3307_v26, %v5645_v55  ;;  %v1781_v15 = vmul.f32 %v3306_v60, %v5645_v55  ;;  %v5647_v5 = vld [vmem:[#allocation18_spill] sm:$0xff] }
 0x16a   : > { %v814_v24 = vmul.f32 %v3570_v48, %v5634_v33  ;;  %v813_v21 = vmul.f32 %v3569_v16, %v5634_v33  ;;  %v4969_v17 = vpop.permute.xlu1 %3314  ;;  %v3573_v50 = vpop.permute.xlu0 %3572  ;;  %v4973_v54 = vadd.f32 %v4801_v8, %v5646_v23  ;;  %v4977_v26 = vadd.f32 %v4803_v25, %v5647_v5  ;;  %v5648_v48 = vld [vmem:[#allocation58_spill] sm:$0xff]  ;;  %v5650_v25 = vld [vmem:[#allocation48_spill] sm:$0xff]  ;;  %v5651_v23 = vld [vmem:[#allocation49_spill] sm:$0xff] }
 0x16b   : > { %v4980_v13 = vadd.f32 %v4811_v11, %v1781_v15  ;;  %v4983_v35 = vadd.f32 %v4808_v41, %v1782_v22  ;;  %v3575_v10 = vunpack.i.h.bf16 %v3573_v50  ;;  %v3574_v19 = vunpack.i.l.bf16 %v3573_v50 }
 0x16c   : > { %v845_v44 = vadd.f32 %v813_v21, %v5648_v48  ;;  %v846_v30 = vadd.f32 %v814_v24, %v5649_v61  ;;  %v4988_v60 = vadd.f32 %v4777_v31, %v823_v34  ;;  %v4991_v8 = vadd.f32 %v4779_v58, %v824_v32 }
 0x16d   : > { %v829_v16 = vadd.f32 %v797_v12, %v5650_v25  ;;  %v830_v11 = vadd.f32 %v798_v53, %v5651_v23  ;;  %v818_v22 = vmul.f32 %v3575_v10, %v5634_v33  ;;  %v817_v24 = vmul.f32 %v3574_v19, %v5634_v33  ;;  %v5652_v12 = vld [vmem:[#allocation14_spill] sm:$0xff] }
 0x16e   : > { %v4995_v15 = vadd.f32 %v1505_v43, %v845_v44  ;;  %v4997_v41 = vadd.f32 %v1506_v42, %v846_v30  ;;  %v3320_v21 = vpop.permute.xlu1 %3319  ;;  %v3578_v50 = vpop.permute.xlu0 %3577  ;;  %v3555_v58 = vunpack.i.h.bf16 %v4885_v28  ;;  %v3554_v32 = vunpack.i.l.bf16 %v4885_v28  ;;  %v5653_v43 = vld [vmem:[#allocation17_spill] sm:$0xff] }
 0x16f   : > { %v3322_v5 = vunpack.i.h.bf16 %v3320_v21  ;;  %v3321_v31 = vunpack.i.l.bf16 %v3320_v21  ;;  %v3580_v34 = vunpack.i.h.bf16 %v3578_v50  ;;  %v3579_v48 = vunpack.i.l.bf16 %v3578_v50 }
 0x170   : > { %v849_v53 = vadd.f32 %v817_v24, %v5652_v12  ;;  %v850_v44 = vadd.f32 %v818_v22, %v5653_v43  ;;  %v5010_v19 = vadd.f32 %v4824_v6, %v829_v16  ;;  %v5013_v25 = vadd.f32 %v4827_v51, %v830_v11 }
 0x171   : > { %v1788_v42 = vmul.f32 %v3322_v5, %v5645_v55  ;;  %v1787_v61 = vmul.f32 %v3321_v31, %v5645_v55  ;;  %v1450_v30 = vmul.f32 %v3580_v34, %v4287_v7  ;;  %v1449_v10 = vmul.f32 %v3579_v48, %v4287_v7  ;;  %v5654_v34 = vld [vmem:[#allocation28_spill] sm:$0xff] }
 0x172   : > { %v5015_v23 = vadd.f32 %v1509_v18, %v849_v53  ;;  %v5017_v28 = vadd.f32 %v1510_v1, %v850_v44  ;;  %v3330_v24 = vpop.permute.xlu1 %3329  ;;  %v3583_v22 = vpop.permute.xlu0 %3582  ;;  %v802_v18 = vmul.f32 %v3555_v58, %v5634_v33  ;;  %v801_v1 = vmul.f32 %v3554_v32, %v5634_v33 }
 0x173   : > { %v5020_v21 = vadd.f32 %v4859_v29, %v1787_v61  ;;  %v5023_v50 = vadd.f32 %v4856_v63, %v1788_v42  ;;  %v1481_v5 = vadd.f32 %v1449_v10, %v4763_v52  ;;  %v1482_v6 = vadd.f32 %v1450_v30, %v4766_v57  ;;  %v5655_v29 = vld [vmem:[#allocation4_spill] sm:$0xff] }
 0x174   : > { %v3332_v16 = vunpack.i.h.bf16 %v3330_v24  ;;  %v3331_v31 = vunpack.i.l.bf16 %v3330_v24  ;;  %v3585_v51 = vunpack.i.h.bf16 %v3583_v22  ;;  %v3584_v11 = vunpack.i.l.bf16 %v3583_v22 }
 0x175   : > { %v5030_v48 = vadd.f32 %v1481_v5, %v5654_v34  ;;  %v5033_v12 = vadd.f32 %v1482_v6, %v5655_v29  ;;  %v5657_v34 = vld [vmem:[#allocation53_spill] sm:$0xff]  ;;  %v5658_v29 = vld [vmem:[#allocation32_spill] sm:$0xff] }
 0x176   : > { %v1792_v63 = vmul.f32 %v3332_v16, %v5645_v55  ;;  %v1791_v52 = vmul.f32 %v3331_v31, %v5645_v55  ;;  %v1456_v57 = vmul.f32 %v3585_v51, %v4287_v7  ;;  %v1455_v53 = vmul.f32 %v3584_v11, %v4287_v7  ;;  %v3340_v43 = vpop.permute.xlu1 %3339  ;;  %v3588_v44 = vpop.permute.xlu0 %3587  ;;  %v5656_v51 = vld [vmem:[#allocation52_spill] sm:$0xff] }
 0x177   : > { %v3342_v42 = vunpack.i.h.bf16 %v3340_v43  ;;  %v3341_v58 = vunpack.i.l.bf16 %v3340_v43  ;;  %v3590_v61 = vunpack.i.h.bf16 %v3588_v44  ;;  %v3589_v32 = vunpack.i.l.bf16 %v3588_v44 }
 0x178   : > { %v5040_v30 = vadd.f32 %v4877_v40, %v1791_v52  ;;  %v5043_v10 = vadd.f32 %v4874_v49, %v1792_v63  ;;  %v1487_v24 = vadd.f32 %v1455_v53, %v4789_v2  ;;  %v1488_v22 = vadd.f32 %v1456_v57, %v4792_v46  ;;  %v5659_v49 = vld [vmem:[#allocation31_spill] sm:$0xff] }
 0x179   : > { %v1796_v5 = vmul.f32 %v3342_v42, %v5645_v55  ;;  %v1795_v6 = vmul.f32 %v3341_v58, %v5645_v55  ;;  %v1460_v16 = vmul.f32 %v3590_v61, %v4287_v7  ;;  %v1459_v31 = vmul.f32 %v3589_v32, %v4287_v7 }
 0x17a   : > { %v833_v11 = vadd.f32 %v801_v1, %v5656_v51  ;;  %v834_v40 = vadd.f32 %v802_v18, %v5657_v34  ;;  %v5054_v52 = vadd.f32 %v1487_v24, %v5658_v29  ;;  %v5057_v63 = vadd.f32 %v1488_v22, %v5659_v49  ;;  %v3350_v2 = vpop.permute.xlu1 %3349  ;;  %v3593_v46 = vpop.permute.xlu0 %3592 }
 0x17b   : > { %v5060_v57 = vadd.f32 %v4911_v59, %v1795_v6  ;;  %v5063_v53 = vadd.f32 %v4908_v45, %v1796_v5  ;;  %v1491_v43 = vadd.f32 %v1459_v31, %v4795_v62  ;;  %v1492_v1 = vadd.f32 %v1460_v16, %v4798_v20 }
 0x17c   : > { %v3352_v44 = vunpack.i.h.bf16 %v3350_v2  ;;  %v3351_v18 = vunpack.i.l.bf16 %v3350_v2  ;;  %v3595_v42 = vunpack.i.h.bf16 %v3593_v46  ;;  %v3594_v58 = vunpack.i.l.bf16 %v3593_v46 }
 0x17d   : > { %v3560_v61 = vunpack.i.h.bf16 %v4905_v27  ;;  %v3559_v32 = vunpack.i.l.bf16 %v4905_v27  ;;  %v5070_v24 = vadd.f32 %v1491_v43, %v4692_v39  ;;  %v5073_v59 = vadd.f32 %v1492_v1, %v4689_v0  ;;  %v5660_v1 = vld [vmem:[#allocation42_spill] sm:$0xff] }
 0x17e   : > { %v1800_v45 = vmul.f32 %v3352_v44, %v5645_v55  ;;  %v1799_v62 = vmul.f32 %v3351_v18, %v5645_v55  ;;  %v1464_v20 = vmul.f32 %v3595_v42, %v4287_v7  ;;  %v1463_v22 = vmul.f32 %v3594_v58, %v4287_v7  ;;  %v3360_v5 = vpop.permute.xlu1 %3359  ;;  %v3598_v6 = vpop.permute.xlu0 %3597 }
 0x17f   : > { %v3362_v16 = vunpack.i.h.bf16 %v3360_v5  ;;  %v3361_v31 = vunpack.i.l.bf16 %v3360_v5  ;;  %v3600_v51 = vunpack.i.h.bf16 %v3598_v6  ;;  %v3599_v27 = vunpack.i.l.bf16 %v3598_v6  ;;  %v5668_v6 = vld [vmem:[#allocation46_spill] sm:$0xff] }
 0x180   : > { %v5080_v39 = vadd.f32 %v4927_v3, %v1799_v62  ;;  %v5083_v0 = vadd.f32 %v4924_v47, %v1800_v45  ;;  %v1495_v34 = vadd.f32 %v1463_v22, %v4836_v9  ;;  %v1496_v29 = vadd.f32 %v1464_v20, %v4839_v37  ;;  %v5661_v3 = vld [vmem:[#allocation47_spill] sm:$0xff]  ;;  %v5662_v47 = vld [vmem:[#allocation34_spill] sm:$0xff]  ;;  %v5663_v9 = vld [vmem:[#allocation33_spill] sm:$0xff] }
 0x181   : > { %v1804_v49 = vmul.f32 %v3362_v16, %v5645_v55  ;;  %v1803_v2 = vmul.f32 %v3361_v31, %v5645_v55  ;;  %v1468_v46 = vmul.f32 %v3600_v51, %v4287_v7  ;;  %v1467_v43 = vmul.f32 %v3599_v27, %v4287_v7  ;;  %v5664_v62 = vld [vmem:[#allocation54_spill] sm:$0xff]  ;;  %v5666_v22 = vld [vmem:[#allocation55_spill] sm:$0xff]  ;;  %v5669_v16 = vld [vmem:[#allocation9_spill] sm:$0xff] }
 0x182   : > { %v5092_v44 = vadd.f32 %v5660_v1, %v833_v11  ;;  %v5095_v18 = vadd.f32 %v5661_v3, %v834_v40  ;;  %v5098_v42 = vadd.f32 %v1495_v34, %v5662_v47  ;;  %v5101_v58 = vadd.f32 %v1496_v29, %v5663_v9  ;;  %v3370_v37 = vpop.permute.xlu1 %3369  ;;  %v3603_v45 = vpop.permute.xlu0 %3602  ;;  %v5670_v3 = vld [vmem:[#allocation35_spill] sm:$0xff] }
 0x183   : > { %v5104_v20 = vadd.f32 %v5664_v62, %v1803_v2  ;;  %v5107_v5 = vadd.f32 %v5666_v22, %v1804_v49  ;;  %v1499_v11 = vadd.f32 %v1467_v43, %v5668_v6  ;;  %v1500_v31 = vadd.f32 %v1468_v46, %v5669_v16  ;;  %v5671_v2 = vld [vmem:[#allocation5_spill] sm:$0xff]  ;;  %v5675_v16 = vld [vmem:[#allocation27_spill] sm:$0xff] }
 0x184   : > { %v3372_v40 = vunpack.i.h.bf16 %v3370_v37  ;;  %v3371_v51 = vunpack.i.l.bf16 %v3370_v37  ;;  %v3605_v27 = vunpack.i.h.bf16 %v3603_v45  ;;  %v3604_v34 = vunpack.i.l.bf16 %v3603_v45 }
 0x185   : > { %5665 = vst [vmem:[#allocation69_spill] sm:$0xff] %v5104_v20  ;;  %5667 = vst [vmem:[#allocation68_spill] sm:$0xff] %v5107_v5  ;;  %v806_v1 = vmul.f32 %v3560_v61, %v5634_v33  ;;  %v805_v29 = vmul.f32 %v3559_v32, %v5634_v33  ;;  %v5114_v47 = vadd.f32 %v1499_v11, %v5670_v3  ;;  %v5678_v5 = vld [vmem:[#allocation10_spill] sm:$0xff] }
 0x186   : > { %v5117_v9 = vadd.f32 %v1500_v31, %v5671_v2  ;;  %v1808_v49 = vmul.f32 %v3372_v40, %v5645_v55  ;;  %v1807_v43 = vmul.f32 %v3371_v51, %v5645_v55  ;;  %v1472_v46 = vmul.f32 %v3605_v27, %v4287_v7  ;;  %v3456_v62 = vpop.permute.xlu1 %3455  ;;  %v3608_v45 = vpop.permute.xlu0 %3607  ;;  %v5676_v40 = vld [vmem:[#allocation51_spill] sm:$0xff] }
 0x187   : > { %v1471_v37 = vmul.f32 %v3604_v34, %v4287_v7  ;;  %v3458_v22 = vunpack.i.h.bf16 %v3456_v62  ;;  %v3457_v61 = vunpack.i.l.bf16 %v3456_v62  ;;  %v3610_v6 = vunpack.i.h.bf16 %v3608_v45  ;;  %v5677_v62 = vld [vmem:[#allocation12_spill] sm:$0xff] }
 0x188   : > { %5672 = vst [vmem:[#allocation8_spill] sm:$0xff] %v5117_v9  ;;  %v3609_v33 = vunpack.i.l.bf16 %v3608_v45  ;;  %v5124_v32 = vadd.f32 %v4965_v36, %v1807_v43  ;;  %v5127_v11 = vadd.f32 %v4962_v4, %v1808_v49  ;;  %v1504_v51 = vadd.f32 %v1472_v46, %v5676_v40  ;;  %v5679_v43 = vld [vmem:[#allocation37_spill] sm:$0xff]  ;;  %v5681_v4 = vld [vmem:[#allocation36_spill] sm:$0xff] }
 0x189   : > { %v1503_v31 = vadd.f32 %v1471_v37, %v5675_v16  ;;  %v1812_v27 = vmul.f32 %v3458_v22, %v5645_v55  ;;  %v1811_v34 = vmul.f32 %v3457_v61, %v5645_v55  ;;  %v1476_v3 = vmul.f32 %v3610_v6, %v4287_v7  ;;  %v5683_v46 = vld [vmem:[#allocation41_spill] sm:$0xff]  ;;  %v5685_v22 = vld [vmem:[#allocation16_spill] sm:$0xff]  ;;  %v5687_v6 = vld [vmem:[#allocation50_spill] sm:$0xff] }
 0x18a   : > { %5673 = vst [vmem:[#allocation56_spill] sm:$0xff] %v5124_v32  ;;  %5674 = vst [vmem:[#allocation72_spill] sm:$0xff] %v5127_v11  ;;  %v1475_v2 = vmul.f32 %v3609_v33, %v4287_v7  ;;  %v837_v45 = vadd.f32 %v805_v29, %v5677_v62  ;;  %v838_v36 = vadd.f32 %v806_v1, %v5678_v5  ;;  %v3613_v37 = vpop.permute.xlu0 %3612  ;;  %v5688_v33 = vld [vmem:[#allocation30_spill] sm:$0xff] }
 0x18b   : > { %v5138_v32 = vadd.f32 %v1503_v31, %v5679_v43  ;;  %v5141_v49 = vadd.f32 %v1504_v51, %v5681_v4  ;;  %v5144_v16 = vadd.f32 %v5683_v46, %v1811_v34  ;;  %v5147_v61 = vadd.f32 %v5685_v22, %v1812_v27  ;;  %v3467_v29 = vpop.permute.xlu1 %3466  ;;  %v5689_v4 = vld [vmem:[#allocation7_spill] sm:$0xff]  ;;  %v5691_v34 = vld [vmem:[#allocation6_spill] sm:$0xff] }
 0x18c   : > { %v1507_v40 = vadd.f32 %v1475_v2, %v5687_v6  ;;  %v1508_v11 = vadd.f32 %v1476_v3, %v5688_v33  ;;  %v3615_v62 = vunpack.i.h.bf16 %v3613_v37  ;;  %v3614_v5 = vunpack.i.l.bf16 %v3613_v37  ;;  %v5693_v6 = vld [vmem:[#allocation43_spill] sm:$0xff] }
 0x18d   : > { %5680 = vst [vmem:[#allocation71_spill] sm:$0xff] %v5138_v32  ;;  %5682 = vst [vmem:[#allocation13_spill] sm:$0xff] %v5141_v49  ;;  %v3469_v1 = vunpack.i.h.bf16 %v3467_v29  ;;  %v3468_v31 = vunpack.i.l.bf16 %v3467_v29  ;;  %v3317_v43 = vunpack.i.h.bf16 %v4969_v17  ;;  %v3316_v51 = vunpack.i.l.bf16 %v4969_v17  ;;  %v5694_v29 = vld [vmem:[#allocation26_spill] sm:$0xff] }
 0x18e   : > { %5684 = vst [vmem:[#allocation3_spill] sm:$0xff] %v5144_v16  ;;  %5686 = vst [vmem:[#allocation20_spill] sm:$0xff] %v5147_v61  ;;  %v5154_v49 = vadd.f32 %v1507_v40, %v5689_v4  ;;  %v5157_v46 = vadd.f32 %v1508_v11, %v5691_v34  ;;  %v1480_v27 = vmul.f32 %v3615_v62, %v4287_v7  ;;  %v3624_v22 = vpop.permute.xlu0 %3623  ;;  %v5695_v11 = vld [vmem:[#allocation39_spill] sm:$0xff]  ;;  %v5696_v16 = vld [vmem:[#allocation40_spill] sm:$0xff] }
 0x18f   : > { %v1479_v2 = vmul.f32 %v3614_v5, %v4287_v7  ;;  %v1948_v3 = vmul.f32 %v3469_v1, %v5606_v38  ;;  %v1947_v37 = vmul.f32 %v3468_v31, %v5606_v38  ;;  %v5164_v33 = vadd.f32 %v5693_v6, %v837_v45  ;;  %v3472_v61 = vpop.permute.xlu1 %3471  ;;  %v5698_v5 = vld [vmem:[#allocation15_spill] sm:$0xff] }
 0x190   : > { %5690 = vst [vmem:[#allocation75_spill] sm:$0xff] %v5154_v49  ;;  %5692 = vst [vmem:[#allocation2_spill] sm:$0xff] %v5157_v46  ;;  %v5167_v17 = vadd.f32 %v5694_v29, %v838_v36  ;;  %v3626_v40 = vunpack.i.h.bf16 %v3624_v22  ;;  %v3625_v4 = vunpack.i.l.bf16 %v3624_v22  ;;  %v1512_v62 = vadd.f32 %v1480_v27, %v5696_v16  ;;  %v5697_v46 = vld [vmem:[#allocation22_spill] sm:$0xff] }
 0x191   : > { %v1511_v34 = vadd.f32 %v1479_v2, %v5695_v11  ;;  %v1979_v7 = vadd.f32 %v1947_v37, %v5697_v46  ;;  %v1980_v1 = vadd.f32 %v1948_v3, %v5698_v5  ;;  %v5699_v49 = vld [vmem:[#allocation38_spill] sm:$0xff]  ;;  %v3474_v45 = vunpack.i.h.bf16 %v3472_v61  ;;  %v5702_v2 = vld [vmem:[#allocation23_spill] sm:$0xff] }
 0x192   : > { %v2144_v31 = vmul.f32 %v3626_v40, %v5699_v49  ;;  %v2143_v32 = vmul.f32 %v3625_v4, %v5699_v49  ;;  %v3473_v6 = vunpack.i.l.bf16 %v3472_v61  ;;  %v1786_v36 = vmul.f32 %v3317_v43, %v5645_v55  ;;  %v5700_v22 = vld [vmem:[#allocation62_spill] sm:$0xff]  ;;  %v3639_v16 = vpop.permute.xlu0 %3638 }
 0x193   : > { %v1785_v29 = vmul.f32 %v3316_v51, %v5645_v55  ;;  %v5178_v20 = vadd.f32 %v1511_v34, %v5700_v22  ;;  %v5181_v11 = vadd.f32 %v1512_v62, %v5702_v2  ;;  %v1950_v3 = vmul.f32 %v3474_v45, %v5606_v38  ;;  %v3482_v61 = vpop.permute.xlu1 %3481  ;;  %v5188_v55 = vld [vmem:[%s5411_s2] ss:$0 sm:$0xff] }
 0x194   : > { %v2175_v46 = vadd.f32 %v2143_v32, %v1979_v7  ;;  %v2176_v27 = vadd.f32 %v2144_v31, %v1980_v1  ;;  %v1949_v37 = vmul.f32 %v3473_v6, %v5606_v38  ;;  %v3641_v43 = vunpack.i.h.bf16 %v3639_v16 }
 0x195   : > { %5701 = vst [vmem:[#allocation44_spill] sm:$0xff] %v5178_v20  ;;  %5703 = vst [vmem:[#allocation45_spill] sm:$0xff] %v5181_v11  ;;  %v3640_v51 = vunpack.i.l.bf16 %v3639_v16  ;;  %v3484_v40 = vunpack.i.h.bf16 %v3482_v61  ;;  %v3483_v4 = vunpack.i.l.bf16 %v3482_v61  ;;  %v5194_v7 = vadd.f32 %v1950_v3, %v1786_v36  ;;  %v5704_v16 = vld [vmem:[#allocation61_spill] sm:$0xff]  ;;  %v5707_v20 = vld [vmem:[#allocation63_spill] sm:$0xff] }
 0x196   : > { %v2207_v34 = vadd.f32 %v2175_v46, %v4988_v60  ;;  %v2208_v32 = vadd.f32 %v2176_v27, %v4991_v8  ;;  %v5192_v62 = vadd.f32 %v1949_v37, %v1785_v29  ;;  %v2150_v5 = vmul.f32 %v3641_v43, %v5699_v49  ;;  %v3649_v6 = vpop.permute.xlu0 %3648  ;;  %v5705_v46 = vld [vmem:[#allocation60_spill] sm:$0xff] }
 0x197   : > { %v2149_v1 = vmul.f32 %v3640_v51, %v5699_v49  ;;  %v1954_v31 = vmul.f32 %v3484_v40, %v5606_v38  ;;  %v1953_v45 = vmul.f32 %v3483_v4, %v5606_v38  ;;  %v3651_v2 = vunpack.i.h.bf16 %v3649_v6  ;;  %v3492_v29 = vpop.permute.xlu1 %3491 }
 0x198   : > { %v2246_v22 = vadd.f32 %v5188_v55, %v2207_v34  ;;  %v2247_v60 = vadd.f32 %v5188_v55, %v2208_v32  ;;  %v3650_v8 = vunpack.i.l.bf16 %v3649_v6  ;;  %v3494_v3 = vunpack.i.h.bf16 %v3492_v29 }
 0x199   : > { %v1985_v36 = vadd.f32 %v1953_v45, %v5704_v16  ;;  %v1986_v27 = vadd.f32 %v1954_v31, %v5705_v46  ;;  %v3493_v37 = vunpack.i.l.bf16 %v3492_v29  ;;  %v2154_v51 = vmul.f32 %v3651_v2, %v5699_v49  ;;  %v5706_v46 = vld [vmem:[#allocation64_spill] sm:$0xff] }
 0x19a   : > { %v2278_v61 = vmax.f32 %v2246_v22, 0.0  ;;  %v2279_v43 = vmax.f32 %v2247_v60, 0.0  ;;  %v2153_v40 = vmul.f32 %v3650_v8, %v5699_v49  ;;  %v1958_v32 = vmul.f32 %v3494_v3, %v5606_v38  ;;  %v3659_v45 = vpop.permute.xlu0 %3658 }
 0x19b   : > { %v2181_v4 = vadd.f32 %v2149_v1, %v1985_v36  ;;  %v2182_v34 = vadd.f32 %v2150_v5, %v1986_v27  ;;  %v1957_v31 = vmul.f32 %v3493_v37, %v5606_v38  ;;  %v3661_v60 = vunpack.i.h.bf16 %v3659_v45  ;;  %v3502_v29 = vpop.permute.xlu1 %3501 }
 0x19c   : > { %v2668_v6 = vpack.c.bf16 %v2278_v61, %v2278_v61  ;;  %v2669_v22 = vpack.c.bf16 %v2279_v43, %v2279_v43  ;;  %v3660_v2 = vunpack.i.l.bf16 %v3659_v45  ;;  %v1990_v9 = vadd.f32 %v1958_v32, %v5707_v20 }
 0x19d   : > { %v2213_v8 = vadd.f32 %v2181_v4, %v5010_v19  ;;  %v2214_v16 = vadd.f32 %v2182_v34, %v5013_v25  ;;  %v1989_v11 = vadd.f32 %v1957_v31, %v5706_v46  ;;  %v2158_v5 = vmul.f32 %v3661_v60, %v5699_v49  ;;  %v5708_v60 = vld [vmem:[#allocation25_spill] sm:$0xff] }
 0x19e   : > { %2439 = vst.msk [vmem:[%s5210_s4 + $0x8] sm:$0xf] %vm2436_vm0, %v2668_v6  ;;  %2440 = vst.msk [vmem:[%s5210_s4 + $0xc] sm:$0xf] %vm2436_vm0, %v2669_v22  ;;  %v2157_v1 = vmul.f32 %v3660_v2, %v5699_v49  ;;  %v3504_v36 = vunpack.i.h.bf16 %v3502_v29  ;;  %v3503_v27 = vunpack.i.l.bf16 %v3502_v29  ;;  %v2186_v25 = vadd.f32 %v2154_v51, %v1990_v9  ;;  %v3669_v61 = vpop.permute.xlu0 %3668 }
 0x19f   : > { %v2252_v3 = vadd.f32 %v5188_v55, %v2213_v8  ;;  %v2253_v19 = vadd.f32 %v5188_v55, %v2214_v16  ;;  %v2185_v37 = vadd.f32 %v2153_v40, %v1989_v11  ;;  %v3671_v4 = vunpack.i.h.bf16 %v3669_v61  ;;  %v3512_v32 = vpop.permute.xlu1 %3511  ;;  %v5709_v11 = vld [vmem:[#allocation24_spill] sm:$0xff] }
 0x1a0   : > { %v1962_v43 = vmul.f32 %v3504_v36, %v5606_v38  ;;  %v1961_v20 = vmul.f32 %v3503_v27, %v5606_v38  ;;  %v3670_v34 = vunpack.i.l.bf16 %v3669_v61  ;;  %v2218_v22 = vadd.f32 %v2186_v25, %v5095_v18 }
 0x1a1   : > { %v2284_v31 = vmax.f32 %v2252_v3, 0.0  ;;  %v2285_v45 = vmax.f32 %v2253_v19, 0.0  ;;  %v2217_v6 = vadd.f32 %v2185_v37, %v5092_v44  ;;  %v2162_v51 = vmul.f32 %v3671_v4, %v5699_v49 }
 0x1a2   : > { %v1993_v2 = vadd.f32 %v1961_v20, %v5708_v60  ;;  %v1994_v9 = vadd.f32 %v1962_v43, %v5709_v11  ;;  %v2161_v40 = vmul.f32 %v3670_v34, %v5699_v49  ;;  %v2257_v46 = vadd.f32 %v5188_v55, %v2218_v22  ;;  %v3679_v36 = vpop.permute.xlu0 %3678 }
 0x1a3   : > { %v2674_v29 = vpack.c.bf16 %v2284_v31, %v2284_v31  ;;  %v2675_v8 = vpack.c.bf16 %v2285_v45, %v2285_v45  ;;  %v2256_v16 = vadd.f32 %v5188_v55, %v2217_v6  ;;  %v3514_v3 = vunpack.i.h.bf16 %v3512_v32  ;;  %v3522_v19 = vpop.permute.xlu1 %3521 }
 0x1a4   : > { %v2189_v44 = vadd.f32 %v2157_v1, %v1993_v2  ;;  %v2190_v27 = vadd.f32 %v2158_v5, %v1994_v9  ;;  %v3513_v18 = vunpack.i.l.bf16 %v3512_v32  ;;  %v2289_v25 = vmax.f32 %v2257_v46, 0.0  ;;  %v5710_v2 = vld [vmem:[#allocation66_spill] sm:$0xff] }
 0x1a5   : > { %2445 = vst.msk [vmem:[%s5210_s4 + $0x20] sm:$0xf] %vm2436_vm0, %v2674_v29  ;;  %2446 = vst.msk [vmem:[%s5210_s4 + $0x24] sm:$0xf] %vm2436_vm0, %v2675_v8  ;;  %v2288_v37 = vmax.f32 %v2256_v16, 0.0  ;;  %v3681_v61 = vunpack.i.h.bf16 %v3679_v36  ;;  %v3680_v43 = vunpack.i.l.bf16 %v3679_v36  ;;  %v1966_v1 = vmul.f32 %v3514_v3, %v5606_v38 }
 0x1a6   : > { %v2221_v20 = vadd.f32 %v2189_v44, %v5164_v33  ;;  %v2222_v4 = vadd.f32 %v2190_v27, %v5167_v17  ;;  %v1965_v5 = vmul.f32 %v3513_v18, %v5606_v38  ;;  %v2679_v32 = vpack.c.bf16 %v2289_v25, %v2289_v25  ;;  %v3689_v6 = vpop.permute.xlu0 %3688  ;;  %v5711_v33 = vld [vmem:[#allocation65_spill] sm:$0xff] }
 0x1a7   : > { %v2678_v34 = vpack.c.bf16 %v2288_v37, %v2288_v37  ;;  %v2166_v31 = vmul.f32 %v3681_v61, %v5699_v49  ;;  %v2165_v45 = vmul.f32 %v3680_v43, %v5699_v49  ;;  %v1998_v9 = vadd.f32 %v1966_v1, %v5711_v33  ;;  %v3532_v17 = vpop.permute.xlu1 %3531  ;;  %v5712_v1 = vld [vmem:[#allocation70_spill] sm:$0xff] }
 0x1a8   : > { %v2260_v22 = vadd.f32 %v5188_v55, %v2221_v20  ;;  %v2261_v60 = vadd.f32 %v5188_v55, %v2222_v4  ;;  %v1997_v11 = vadd.f32 %v1965_v5, %v5710_v2  ;;  %2450 = vst.msk [vmem:[%s5210_s4 + $0x34] sm:$0xf] %vm2436_vm0, %v2679_v32  ;;  %v3524_v29 = vunpack.i.h.bf16 %v3522_v19 }
 0x1a9   : > { %2449 = vst.msk [vmem:[%s5210_s4 + $0x30] sm:$0xf] %vm2436_vm0, %v2678_v34  ;;  %v3523_v8 = vunpack.i.l.bf16 %v3522_v19  ;;  %v3691_v16 = vunpack.i.h.bf16 %v3689_v6  ;;  %v3690_v46 = vunpack.i.l.bf16 %v3689_v6  ;;  %v2194_v3 = vadd.f32 %v2162_v51, %v1998_v9  ;;  %v5713_v34 = vld [vmem:[#allocation67_spill] sm:$0xff] }
 0x1aa   : > { %v2292_v36 = vmax.f32 %v2260_v22, 0.0  ;;  %v2293_v44 = vmax.f32 %v2261_v60, 0.0  ;;  %v2193_v27 = vadd.f32 %v2161_v40, %v1997_v11  ;;  %v1970_v18 = vmul.f32 %v3524_v29, %v5606_v38 }
 0x1ab   : > { %v1969_v37 = vmul.f32 %v3523_v8, %v5606_v38  ;;  %v2170_v25 = vmul.f32 %v3691_v16, %v5699_v49  ;;  %v2169_v61 = vmul.f32 %v3690_v46, %v5699_v49  ;;  %v2226_v4 = vadd.f32 %v2194_v3, %v4957_v14 }
 0x1ac   : > { %v2682_v43 = vpack.c.bf16 %v2292_v36, %v2292_v36  ;;  %v2683_v20 = vpack.c.bf16 %v2293_v44, %v2293_v44  ;;  %v2225_v19 = vadd.f32 %v2193_v27, %v4955_v56  ;;  %v2002_v40 = vadd.f32 %v1970_v18, %v5713_v34  ;;  %v3619_v6 = vpop.permute.xlu1 %3618  ;;  %v5714_v44 = vld [vmem:[#allocation74_spill] sm:$0xff] }
 0x1ad   : > { %v2001_v5 = vadd.f32 %v1969_v37, %v5712_v1  ;;  %v3534_v32 = vunpack.i.h.bf16 %v3532_v17  ;;  %v3533_v51 = vunpack.i.l.bf16 %v3532_v17  ;;  %v2265_v60 = vadd.f32 %v5188_v55, %v2226_v4 }
 0x1ae   : > { %2453 = vst.msk [vmem:[%s5210_s4 + $0x40] sm:$0xf] %vm2436_vm0, %v2682_v43  ;;  %2454 = vst.msk [vmem:[%s5210_s4 + $0x44] sm:$0xf] %vm2436_vm0, %v2683_v20  ;;  %v2264_v22 = vadd.f32 %v5188_v55, %v2225_v19  ;;  %v3621_v2 = vunpack.i.h.bf16 %v3619_v6  ;;  %v3620_v11 = vunpack.i.l.bf16 %v3619_v6  ;;  %v2198_v33 = vadd.f32 %v2166_v31, %v2002_v40 }
 0x1af   : > { %v2197_v56 = vadd.f32 %v2165_v45, %v2001_v5  ;;  %v1974_v14 = vmul.f32 %v3534_v32, %v5606_v38  ;;  %v1973_v9 = vmul.f32 %v3533_v51, %v5606_v38  ;;  %v2297_v8 = vmax.f32 %v2265_v60, 0.0  ;;  %v5715_v45 = vld [vmem:[#allocation73_spill] sm:$0xff] }
 0x1b0   : > { %v2296_v29 = vmax.f32 %v2264_v22, 0.0  ;;  %v2142_v17 = vmul.f32 %v3621_v2, %v5699_v49  ;;  %v2141_v16 = vmul.f32 %v3620_v11, %v5699_v49  ;;  %v2230_v36 = vadd.f32 %v2198_v33, %v4997_v41  ;;  %v3629_v3 = vpop.permute.xlu1 %3628 }
 0x1b1   : > { %v2229_v46 = vadd.f32 %v2197_v56, %v4995_v15  ;;  %v2005_v27 = vadd.f32 %v1973_v9, %v5714_v44  ;;  %v2006_v31 = vadd.f32 %v1974_v14, %v5715_v45  ;;  %v2687_v37 = vpack.c.bf16 %v2297_v8, %v2297_v8 }
 0x1b2   : > { %v2686_v18 = vpack.c.bf16 %v2296_v29, %v2296_v29  ;;  %v2173_v38 = vadd.f32 %v2141_v16, %v4980_v13  ;;  %v2174_v43 = vadd.f32 %v2142_v17, %v4983_v35  ;;  %v2269_v19 = vadd.f32 %v5188_v55, %v2230_v36 }
 0x1b3   : > { %v2268_v20 = vadd.f32 %v5188_v55, %v2229_v46  ;;  %v2201_v4 = vadd.f32 %v2169_v61, %v2005_v27  ;;  %v2202_v1 = vadd.f32 %v2170_v25, %v2006_v31  ;;  %2458 = vst.msk [vmem:[%s5210_s4 + $0x54] sm:$0xf] %vm2436_vm0, %v2687_v37  ;;  %v3631_v5 = vunpack.i.h.bf16 %v3629_v3 }
 0x1b4   : > { %2457 = vst.msk [vmem:[%s5210_s4 + $0x50] sm:$0xf] %vm2436_vm0, %v2686_v18  ;;  %v2205_v15 = vadd.f32 %v2173_v38, %v5030_v48  ;;  %v2206_v41 = vadd.f32 %v2174_v43, %v5033_v12  ;;  %v3630_v34 = vunpack.i.l.bf16 %v3629_v3  ;;  %v2301_v13 = vmax.f32 %v2269_v19, 0.0  ;;  %v3634_v61 = vpop.permute.xlu1 %3633 }
 0x1b5   : > { %v2300_v40 = vmax.f32 %v2268_v20, 0.0  ;;  %v2233_v35 = vadd.f32 %v2201_v4, %v5015_v23  ;;  %v2234_v32 = vadd.f32 %v2202_v1, %v5017_v28  ;;  %v2146_v6 = vmul.f32 %v3631_v5, %v5699_v49 }
 0x1b6   : > { %v2244_v25 = vadd.f32 %v5188_v55, %v2205_v15  ;;  %v2245_v51 = vadd.f32 %v5188_v55, %v2206_v41  ;;  %v2145_v48 = vmul.f32 %v3630_v34, %v5699_v49  ;;  %v2691_v22 = vpack.c.bf16 %v2301_v13, %v2301_v13 }
 0x1b7   : > { %v2690_v12 = vpack.c.bf16 %v2300_v40, %v2300_v40  ;;  %v2272_v60 = vadd.f32 %v5188_v55, %v2233_v35  ;;  %v2273_v2 = vadd.f32 %v5188_v55, %v2234_v32  ;;  %v2178_v28 = vadd.f32 %v2146_v6, %v5194_v7 }
 0x1b8   : > { %v2276_v11 = vmax.f32 %v2244_v25, 0.0  ;;  %v2277_v23 = vmax.f32 %v2245_v51, 0.0  ;;  %v2177_v56 = vadd.f32 %v2145_v48, %v5192_v62  ;;  %2462 = vst.msk [vmem:[%s5210_s4 + $0x64] sm:$0xf] %vm2436_vm0, %v2691_v22  ;;  %v3636_v9 = vunpack.i.h.bf16 %v3634_v61  ;;  %v3644_v8 = vpop.permute.xlu1 %3643 }
 0x1b9   : > { %2461 = vst.msk [vmem:[%s5210_s4 + $0x60] sm:$0xf] %vm2436_vm0, %v2690_v12  ;;  %v2304_v33 = vmax.f32 %v2272_v60, 0.0  ;;  %v2305_v14 = vmax.f32 %v2273_v2, 0.0  ;;  %v3635_v29 = vunpack.i.l.bf16 %v3634_v61  ;;  %v2210_v62 = vadd.f32 %v2178_v28, %v4977_v26 }
 0x1ba   : > { %v2666_v17 = vpack.c.bf16 %v2276_v11, %v2276_v11  ;;  %v2667_v16 = vpack.c.bf16 %v2277_v23, %v2277_v23  ;;  %v2209_v46 = vadd.f32 %v2177_v56, %v4973_v54  ;;  %v2148_v44 = vmul.f32 %v3636_v9, %v5699_v49 }
 0x1bb   : > { %v2694_v7 = vpack.c.bf16 %v2304_v33, %v2304_v33  ;;  %v2695_v36 = vpack.c.bf16 %v2305_v14, %v2305_v14  ;;  %v2147_v27 = vmul.f32 %v3635_v29, %v5699_v49  ;;  %v2249_v31 = vadd.f32 %v5188_v55, %v2210_v62 }
 0x1bc   : > { %2437 = vst.msk [vmem:[%s5210_s4] sm:$0xf] %vm2436_vm0, %v2666_v17  ;;  %2438 = vst.msk [vmem:[%s5210_s4 + $0x4] sm:$0xf] %vm2436_vm0, %v2667_v16  ;;  %v2248_v45 = vadd.f32 %v5188_v55, %v2209_v46  ;;  %v3646_v3 = vunpack.i.h.bf16 %v3644_v8  ;;  %v3645_v18 = vunpack.i.l.bf16 %v3644_v8  ;;  %v2180_v26 = vadd.f32 %v2148_v44, %v5023_v50  ;;  %v3654_v37 = vpop.permute.xlu1 %3653  ;;  %v5716_v16 = vld [vmem:[#allocation8_spill] sm:$0xff] }
 0x1bd   : > { %2465 = vst.msk [vmem:[%s5210_s4 + $0x70] sm:$0xf] %vm2436_vm0, %v2694_v7  ;;  %2466 = vst.msk [vmem:[%s5210_s4 + $0x74] sm:$0xf] %vm2436_vm0, %v2695_v36  ;;  %v2179_v54 = vadd.f32 %v2147_v27, %v5020_v21  ;;  %v2281_v43 = vmax.f32 %v2249_v31, 0.0  ;;  %v3656_v15 = vunpack.i.h.bf16 %v3654_v37  ;;  %v3655_v41 = vunpack.i.l.bf16 %v3654_v37 }
 0x1be   : > { %v2280_v38 = vmax.f32 %v2248_v45, 0.0  ;;  %v2152_v20 = vmul.f32 %v3646_v3, %v5699_v49  ;;  %v2151_v19 = vmul.f32 %v3645_v18, %v5699_v49  ;;  %v2212_v1 = vadd.f32 %v2180_v26, %v5057_v63  ;;  %v5717_v18 = vld [vmem:[#allocation69_spill] sm:$0xff]  ;;  %v5718_v26 = vld [vmem:[#allocation68_spill] sm:$0xff] }
 0x1bf   : > { %v2211_v4 = vadd.f32 %v2179_v54, %v5054_v52  ;;  %v2671_v34 = vpack.c.bf16 %v2281_v43, %v2281_v43  ;;  %v2156_v35 = vmul.f32 %v3656_v15, %v5699_v49  ;;  %v2155_v32 = vmul.f32 %v3655_v41, %v5699_v49  ;;  %v5720_v15 = vld [vmem:[#allocation13_spill] sm:$0xff] }
 0x1c0   : > { %v2670_v5 = vpack.c.bf16 %v2280_v38, %v2280_v38  ;;  %v2183_v21 = vadd.f32 %v2151_v19, %v5040_v30  ;;  %v2184_v50 = vadd.f32 %v2152_v20, %v5043_v10  ;;  %v2251_v13 = vadd.f32 %v5188_v55, %v2212_v1  ;;  %v3664_v61 = vpop.permute.xlu1 %3663 }
 0x1c1   : > { %v2250_v40 = vadd.f32 %v5188_v55, %v2211_v4  ;;  %2442 = vst.msk [vmem:[%s5210_s4 + $0x14] sm:$0xf] %vm2436_vm0, %v2671_v34  ;;  %v3666_v30 = vunpack.i.h.bf16 %v3664_v61  ;;  %v3665_v25 = vunpack.i.l.bf16 %v3664_v61  ;;  %v2187_v6 = vadd.f32 %v2155_v32, %v5060_v57  ;;  %v5719_v4 = vld [vmem:[#allocation71_spill] sm:$0xff] }
 0x1c2   : > { %2441 = vst.msk [vmem:[%s5210_s4 + $0x10] sm:$0xf] %vm2436_vm0, %v2670_v5  ;;  %v2215_v52 = vadd.f32 %v2183_v21, %v5070_v24  ;;  %v2216_v63 = vadd.f32 %v2184_v50, %v5073_v59  ;;  %v2283_v51 = vmax.f32 %v2251_v13, 0.0  ;;  %v2188_v48 = vadd.f32 %v2156_v35, %v5063_v53  ;;  %v5721_v50 = vld [vmem:[#allocation56_spill] sm:$0xff] }
 0x1c3   : > { %v2282_v10 = vmax.f32 %v2250_v40, 0.0  ;;  %v2160_v60 = vmul.f32 %v3666_v30, %v5699_v49  ;;  %v2159_v24 = vmul.f32 %v3665_v25, %v5699_v49  ;;  %v2219_v11 = vadd.f32 %v2187_v6, %v5098_v42  ;;  %v5722_v13 = vld [vmem:[#allocation72_spill] sm:$0xff]  ;;  %v5723_v30 = vld [vmem:[#allocation75_spill] sm:$0xff] }
 0x1c4   : > { %v2254_v12 = vadd.f32 %v5188_v55, %v2215_v52  ;;  %v2255_v22 = vadd.f32 %v5188_v55, %v2216_v63  ;;  %v2673_v59 = vpack.c.bf16 %v2283_v51, %v2283_v51  ;;  %v2220_v23 = vadd.f32 %v2188_v48, %v5101_v58  ;;  %v3674_v56 = vpop.permute.xlu1 %3673 }
 0x1c5   : > { %v2672_v2 = vpack.c.bf16 %v2282_v10, %v2282_v10  ;;  %v2191_v33 = vadd.f32 %v2159_v24, %v5080_v39  ;;  %v2192_v53 = vadd.f32 %v2160_v60, %v5083_v0  ;;  %v2258_v14 = vadd.f32 %v5188_v55, %v2219_v11  ;;  %v5724_v10 = vld [vmem:[#allocation2_spill] sm:$0xff]  ;;  %v5725_v11 = vld [vmem:[#allocation3_spill] sm:$0xff] }
 0x1c6   : > { %v2286_v28 = vmax.f32 %v2254_v12, 0.0  ;;  %v2287_v57 = vmax.f32 %v2255_v22, 0.0  ;;  %2444 = vst.msk [vmem:[%s5210_s4 + $0x1c] sm:$0xf] %vm2436_vm0, %v2673_v59  ;;  %v2259_v9 = vadd.f32 %v5188_v55, %v2220_v23  ;;  %v3676_v42 = vunpack.i.h.bf16 %v3674_v56 }
 0x1c7   : > { %2443 = vst.msk [vmem:[%s5210_s4 + $0x18] sm:$0xf] %vm2436_vm0, %v2672_v2  ;;  %v3675_v29 = vunpack.i.l.bf16 %v3674_v56  ;;  %v2223_v17 = vadd.f32 %v2191_v33, %v5114_v47  ;;  %v2224_v39 = vadd.f32 %v2192_v53, %v5716_v16  ;;  %v2290_v46 = vmax.f32 %v2258_v14, 0.0  ;;  %v5726_v56 = vld [vmem:[#allocation20_spill] sm:$0xff]  ;;  %v5728_v14 = vld [vmem:[#allocation45_spill] sm:$0xff] }
 0x1c8   : > { %v2676_v58 = vpack.c.bf16 %v2286_v28, %v2286_v28  ;;  %v2677_v8 = vpack.c.bf16 %v2287_v57, %v2287_v57  ;;  %v2291_v0 = vmax.f32 %v2259_v9, 0.0  ;;  %v2164_v62 = vmul.f32 %v3676_v42, %v5699_v49  ;;  %v3684_v36 = vpop.permute.xlu1 %3683 }
 0x1c9   : > { %v2163_v7 = vmul.f32 %v3675_v29, %v5699_v49  ;;  %v2262_v44 = vadd.f32 %v5188_v55, %v2223_v17  ;;  %v2263_v27 = vadd.f32 %v5188_v55, %v2224_v39  ;;  %v3686_v47 = vunpack.i.h.bf16 %v3684_v36 }
 0x1ca   : > { %2447 = vst.msk [vmem:[%s5210_s4 + $0x28] sm:$0xf] %vm2436_vm0, %v2676_v58  ;;  %2448 = vst.msk [vmem:[%s5210_s4 + $0x2c] sm:$0xf] %vm2436_vm0, %v2677_v8  ;;  %v3685_v45 = vunpack.i.l.bf16 %v3684_v36  ;;  %v2680_v31 = vpack.c.bf16 %v2290_v46, %v2290_v46  ;;  %v2681_v3 = vpack.c.bf16 %v2291_v0, %v2291_v0  ;;  %v2196_v37 = vadd.f32 %v2164_v62, %v5718_v26 }
 0x1cb   : > { %v2195_v54 = vadd.f32 %v2163_v7, %v5717_v18  ;;  %v2294_v38 = vmax.f32 %v2262_v44, 0.0  ;;  %v2295_v43 = vmax.f32 %v2263_v27, 0.0  ;;  %v2168_v20 = vmul.f32 %v3686_v47, %v5699_v49 }
 0x1cc   : > { %v2167_v19 = vmul.f32 %v3685_v45, %v5699_v49  ;;  %2451 = vst.msk [vmem:[%s5210_s4 + $0x38] sm:$0xf] %vm2436_vm0, %v2680_v31  ;;  %2452 = vst.msk [vmem:[%s5210_s4 + $0x3c] sm:$0xf] %vm2436_vm0, %v2681_v3  ;;  %v2228_v41 = vadd.f32 %v2196_v37, %v5720_v15  ;;  %v3694_v5 = vpop.permute.xlu1 %3693 }
 0x1cd   : > { %v2227_v1 = vadd.f32 %v2195_v54, %v5719_v4  ;;  %v2684_v34 = vpack.c.bf16 %v2294_v38, %v2294_v38  ;;  %v2685_v21 = vpack.c.bf16 %v2295_v43, %v2295_v43  ;;  %v2200_v35 = vadd.f32 %v2168_v20, %v5722_v13 }
 0x1ce   : > { %v2199_v40 = vadd.f32 %v2167_v19, %v5721_v50  ;;  %v2267_v61 = vadd.f32 %v5188_v55, %v2228_v41  ;;  %v3696_v52 = vunpack.i.h.bf16 %v3694_v5  ;;  %v3695_v63 = vunpack.i.l.bf16 %v3694_v5 }
 0x1cf   : > { %v2266_v32 = vadd.f32 %v5188_v55, %v2227_v1  ;;  %2455 = vst.msk [vmem:[%s5210_s4 + $0x48] sm:$0xf] %vm2436_vm0, %v2684_v34  ;;  %2456 = vst.msk [vmem:[%s5210_s4 + $0x4c] sm:$0xf] %vm2436_vm0, %v2685_v21  ;;  %v2232_v51 = vadd.f32 %v2200_v35, %v5724_v10 }
 0x1d0   : > { %v2231_v25 = vadd.f32 %v2199_v40, %v5723_v30  ;;  %v2299_v48 = vmax.f32 %v2267_v61, 0.0  ;;  %v2172_v12 = vmul.f32 %v3696_v52, %v5699_v49  ;;  %v2171_v22 = vmul.f32 %v3695_v63, %v5699_v49  ;;  %v5727_v49 = vld [vmem:[#allocation44_spill] sm:$0xff] }
 0x1d1   : > { %v2298_v6 = vmax.f32 %v2266_v32, 0.0  ;;  %v2271_v24 = vadd.f32 %v5188_v55, %v2232_v51 }
 0x1d2   : > { %v2270_v60 = vadd.f32 %v5188_v55, %v2231_v25  ;;  %v2689_v59 = vpack.c.bf16 %v2299_v48, %v2299_v48  ;;  %v2203_v23 = vadd.f32 %v2171_v22, %v5725_v11  ;;  %v2204_v28 = vadd.f32 %v2172_v12, %v5726_v56 }
 0x1d3   : > { %v2688_v2 = vpack.c.bf16 %v2298_v6, %v2298_v6  ;;  %v2303_v33 = vmax.f32 %v2271_v24, 0.0 }
 0x1d4   : > { %v2302_v57 = vmax.f32 %v2270_v60, 0.0  ;;  %2460 = vst.msk [vmem:[%s5210_s4 + $0x5c] sm:$0xf] %vm2436_vm0, %v2689_v59  ;;  %v2235_v53 = vadd.f32 %v2203_v23, %v5727_v49  ;;  %v2236_v9 = vadd.f32 %v2204_v28, %v5728_v14 }
 0x1d5   : > { %2459 = vst.msk [vmem:[%s5210_s4 + $0x58] sm:$0xf] %vm2436_vm0, %v2688_v2  ;;  %v2693_v29 = vpack.c.bf16 %v2303_v33, %v2303_v33 }
 0x1d6   : > { %v2692_v42 = vpack.c.bf16 %v2302_v57, %v2302_v57  ;;  %v2274_v58 = vadd.f32 %v5188_v55, %v2235_v53  ;;  %v2275_v8 = vadd.f32 %v5188_v55, %v2236_v9 }
 0x1d7   : > { %2464 = vst.msk [vmem:[%s5210_s4 + $0x6c] sm:$0xf] %vm2436_vm0, %v2693_v29 }
 0x1d8   : > { %2463 = vst.msk [vmem:[%s5210_s4 + $0x68] sm:$0xf] %vm2436_vm0, %v2692_v42  ;;  %v2306_v17 = vmax.f32 %v2274_v58, 0.0  ;;  %v2307_v16 = vmax.f32 %v2275_v8, 0.0 }
 0x1da   : > { %v2696_v39 = vpack.c.bf16 %v2306_v17, %v2306_v17  ;;  %v2697_v46 = vpack.c.bf16 %v2307_v16, %v2307_v16 }
 0x1dc   : > { %2467 = vst.msk [vmem:[%s5210_s4 + $0x78] sm:$0xf] %vm2436_vm0, %v2696_v39  ;;  %2468 = vst.msk [vmem:[%s5210_s4 + $0x7c] sm:$0xf] %vm2436_vm0, %v2697_v46 }
 0x1dd PF: > { %s13_s14 = sadd.s32 1, %s3719_s14   ;;  %s5729_s12 = smov %s3715_s13 }
 0x1de   : > { %p10_p5 = scmp.ge.s32.totalorder %s13_s14, 4   ;;  %s5730_s13 = smov %s5732_s15 }
 0x1e0   :  { %12 = sbr.rel (!%p10_p5) target bundleno = 2 (0x2), region = 67 }

</bundles_post_ra>
